<compile_context>
chip_gen: v7x
topology: tpu7x:2x2x1
jax: 0.10.0
libtpu: 0.0.40
codegen_flags: <defaults>
</compile_context>

<pallas_src>
import functools

import jax
import jax.numpy as jnp
from jax.experimental import pallas as pl
from jax.experimental.pallas import tpu as pltpu

cfg = {"variance": [0.1, 0.2]}


def _round_up(x, m):
    return ((x + m - 1) // m) * m


def _choose_prior_tile(P, C):
    """Lane tile over priors: multiple of 128, sized so (C,TP) f32 temporaries
    stay far from the 64-vreg file (spill-free on v5e too)."""
    if C <= 32:
        tp = 512
    elif C <= 96:
        tp = 256
    else:
        tp = 128
    return min(tp, _round_up(P, 128))


def point_form(priors):
    """(cx, cy, w, h) -> (xmin, ymin, xmax, ymax)."""
    return jnp.concatenate([priors[:, :2] - priors[:, 2:] / 2.0,
                            priors[:, :2] + priors[:, 2:] / 2.0], axis=1)


# --------------------------------------------------------------------------
# Pallas kernel 1: fused jaccard IoU + matching reductions.
#   grid = (B, P_pad // TP).  The (O, TP) overlap tile never leaves VMEM;
#   only per-prior best (B, P_pad) and per-truth argmax (B, O) reach HBM.
# --------------------------------------------------------------------------
def _match_kernel(truths_ref, priors_ref, bto_ref, bti_ref, bpi_ref, bpo_scr):
    # truths_ref: (1, O, 4) xyxy    priors_ref: (4, TP) xyxy
    # bto_ref: (1, 1, TP) f32       bti_ref: (1, 1, TP) i32
    # bpi_ref: (1, O, 1) i32 (resident across the prior-tile axis)
    # bpo_scr: (O, 1) f32 running best-prior overlap per ground-truth box.
    p_idx = pl.program_id(1)
    O = bpo_scr.shape[0]
    TP = priors_ref.shape[1]

    t = truths_ref[0]                                   # (O, 4)
    tx1, ty1 = t[:, 0:1], t[:, 1:2]                     # (O, 1)
    tx2, ty2 = t[:, 2:3], t[:, 3:4]
    px1 = priors_ref[0:1, :]                            # (1, TP)
    py1 = priors_ref[1:2, :]
    px2 = priors_ref[2:3, :]
    py2 = priors_ref[3:4, :]

    iw = jnp.maximum(jnp.minimum(tx2, px2) - jnp.maximum(tx1, px1), 0.0)
    ih = jnp.maximum(jnp.minimum(ty2, py2) - jnp.maximum(ty1, py1), 0.0)
    inter = iw * ih                                     # (O, TP)
    area_t = (tx2 - tx1) * (ty2 - ty1)                  # (O, 1)
    area_p = (px2 - px1) * (py2 - py1)                  # (1, TP)
    union = jnp.maximum(area_t + area_p - inter, 1e-12)  # guard degenerate boxes
    ov = inter / union                                  # exact IoU (threshold-critical)

    # broadcast-shaped iotas (no materialized (O,TP) int32 tensors)
    o_iota = jax.lax.broadcasted_iota(jnp.int32, (O, 1), 0)
    p_iota = jax.lax.broadcasted_iota(jnp.int32, (1, TP), 1)

    # per-prior best ground truth (reduce over the O sublane axis)
    bto = jnp.max(ov, axis=0, keepdims=True)                               # (1, TP)
    bti = jnp.min(jnp.where(ov == bto, o_iota, O), axis=0, keepdims=True)  # first max
    bto_ref[0] = bto
    bti_ref[0] = bti

    # per-ground-truth best prior (reduce over lanes, accumulate across tiles)
    tile_max = jnp.max(ov, axis=1, keepdims=True)                          # (O, 1)
    tile_arg = jnp.min(jnp.where(ov == tile_max, p_iota, TP),
                       axis=1, keepdims=True) + p_idx * TP                 # (O, 1)

    @pl.when(p_idx == 0)
    def _():
        bpo_scr[...] = jnp.full((O, 1), -1.0, dtype=jnp.float32)
        bpi_ref[0] = jnp.zeros((O, 1), dtype=jnp.int32)

    better = tile_max > bpo_scr[...]                 # strict ">" keeps first occurrence
    bpi_ref[0] = jnp.where(better, tile_arg, bpi_ref[0])
    bpo_scr[...] = jnp.maximum(tile_max, bpo_scr[...])


def match_pallas(truths, priors_pf_k, tp):
    """truths (B, O, 4) xyxy, priors_pf_k (4, P_pad) xyxy ->
    best_truth_overlap (B,1,P_pad), best_truth_idx (B,1,P_pad), best_prior_idx (B,O,1)."""
    B, O, _ = truths.shape
    P_pad = priors_pf_k.shape[1]

    return pl.pallas_call(
        _match_kernel,
        out_shape=(jax.ShapeDtypeStruct((B, 1, P_pad), jnp.float32),
                   jax.ShapeDtypeStruct((B, 1, P_pad), jnp.int32),
                   jax.ShapeDtypeStruct((B, O, 1), jnp.int32)),
        grid=(B, P_pad // tp),
        in_specs=[pl.BlockSpec((1, O, 4), lambda b, p: (b, 0, 0)),
                  pl.BlockSpec((4, tp), lambda b, p: (0, p))],
        out_specs=(pl.BlockSpec((1, 1, tp), lambda b, p: (b, 0, p)),
                   pl.BlockSpec((1, 1, tp), lambda b, p: (b, 0, p)),
                   pl.BlockSpec((1, O, 1), lambda b, p: (b, 0, 0))),
        scratch_shapes=[pltpu.VMEM((O, 1), jnp.float32)],
        compiler_params=pltpu.CompilerParams(
            dimension_semantics=("parallel", "arbitrary")),
    )(truths, priors_pf_k)


# --------------------------------------------------------------------------
# Pallas kernel 2: fused best-prior override + conf_t construction + encode
# + smooth-L1 (positives) + per-prior softmax cross-entropy.
#   grid = (B, P_pad // TP).  Per-image reductions live in (1,1) VMEM scratch
#   and are written once at the last prior tile.
# --------------------------------------------------------------------------
def _fused_loss_kernel(truths_ref, labels_ref, bpi_ref, bto_ref, bti_ref,
                       priors_ref, loc_ref, conf_ref,
                       lc_ref, lossl_ref, possum_ref, npos_ref,
                       lossl_acc, possum_acc, npos_acc,
                       *, threshold, var0, var1, num_real_priors):
    # truths_ref (1,O,4) f32 | labels_ref / bpi_ref (1,O,1) i32
    # bto_ref (1,1,TP) f32 | bti_ref (1,1,TP) i32 | priors_ref (4,TP) cxcywh
    # loc_ref (1,4,TP) | conf_ref (1,C,TP)
    # lc_ref (1,1,TP) f32 | lossl/possum/npos (1,1,1) f32 (written at last tile)
    p_idx = pl.program_id(1)
    TP = bto_ref.shape[2]
    O = truths_ref.shape[1]

    @pl.when(p_idx == 0)
    def _():
        lossl_acc[...] = jnp.zeros_like(lossl_acc)
        possum_acc[...] = jnp.zeros_like(possum_acc)
        npos_acc[...] = jnp.zeros_like(npos_acc)

    # ---- ensure-best-prior override: index_fill_(2.0) + "last j wins" loop ----
    glob = jax.lax.broadcasted_iota(jnp.int32, (1, TP), 1) + p_idx * TP     # (1,TP)
    o_col = jax.lax.broadcasted_iota(jnp.int32, (O, 1), 0)                  # (O,1)
    hit = glob == bpi_ref[0]                                                # (O,TP)
    forced_idx = jnp.max(jnp.where(hit, o_col, -1), axis=0, keepdims=True)  # (1,TP)
    forced = forced_idx >= 0
    bti = jnp.where(forced, forced_idx, bti_ref[0])                         # (1,TP) i32
    bto = jnp.where(forced, 2.0, bto_ref[0])                                # (1,TP) f32

    # ---- gather matched gt box / label via a one-hot over the O sublane axis ----
    onehot_b = bti == o_col                                                 # (O,TP)
    onehot = onehot_b.astype(jnp.float32)
    t = truths_ref[0]                                                       # (O,4)
    mx1 = jnp.sum(onehot * t[:, 0:1], axis=0, keepdims=True)                # (1,TP)
    my1 = jnp.sum(onehot * t[:, 1:2], axis=0, keepdims=True)
    mx2 = jnp.sum(onehot * t[:, 2:3], axis=0, keepdims=True)
    my2 = jnp.sum(onehot * t[:, 3:4], axis=0, keepdims=True)
    lab = jnp.sum(jnp.where(onehot_b, labels_ref[0], 0),
                  axis=0, keepdims=True)                                    # (1,TP) i32

    # NOTE: like the reference, a dataset label of num_classes-1 would make
    # conf_t == num_classes (out-of-range target for cross entropy).
    conf_t = jnp.where(bto < threshold, 0, lab + 1)                         # (1,TP) i32
    pos = conf_t > 0                                                        # (1,TP)

    # ---- encode(matched, priors, variance) + smooth-L1 over positives ----
    p_cx = priors_ref[0:1, :]
    p_cy = priors_ref[1:2, :]
    p_w = priors_ref[2:3, :]
    p_h = priors_ref[3:4, :]
    g_cx = ((mx1 + mx2) * 0.5 - p_cx) / (var0 * p_w)
    g_cy = ((my1 + my2) * 0.5 - p_cy) / (var0 * p_h)
    g_w = jnp.log(jnp.maximum((mx2 - mx1) / p_w, 1e-12)) / var1   # degenerate-gt guard
    g_h = jnp.log(jnp.maximum((my2 - my1) / p_h, 1e-12)) / var1

    loc_p = loc_ref[0].astype(jnp.float32)                                  # (4,TP)

    def _sl1(d):
        ad = jnp.abs(d)
        return jnp.where(ad < 1.0, 0.5 * d * d, ad - 0.5)

    l_elem = (_sl1(loc_p[0:1, :] - g_cx) + _sl1(loc_p[1:2, :] - g_cy)
              + _sl1(loc_p[2:3, :] - g_w) + _sl1(loc_p[3:4, :] - g_h))      # (1,TP)
    lossl_acc[...] += jnp.sum(jnp.where(pos, l_elem, 0.0), axis=1, keepdims=True)

    # ---- per-prior softmax cross-entropy: logsumexp(conf) - conf[target] ----
    conf = conf_ref[0].astype(jnp.float32)                                  # (C,TP)
    C = conf.shape[0]
    m = jnp.max(conf, axis=0, keepdims=True)                                # (1,TP)
    sumexp = jnp.sum(jnp.exp(conf - m), axis=0, keepdims=True)
    cls_iota = jax.lax.broadcasted_iota(jnp.int32, (C, 1), 0)
    gathered = jnp.sum(jnp.where(cls_iota == conf_t, conf, 0.0),
                       axis=0, keepdims=True)                               # (1,TP)
    lc = jnp.log(sumexp) + m - gathered                                     # (1,TP) >= 0

    # positives / padded lanes zeroed -> output is directly the mining candidate row
    valid = glob < num_real_priors
    lc_ref[0] = jnp.where(jnp.logical_or(pos, jnp.logical_not(valid)), 0.0, lc)

    possum_acc[...] += jnp.sum(jnp.where(pos, lc, 0.0), axis=1, keepdims=True)
    npos_acc[...] += jnp.sum(pos.astype(jnp.float32), axis=1, keepdims=True)

    @pl.when(p_idx == pl.num_programs(1) - 1)
    def _():
        lossl_ref[0] = lossl_acc[...]
        possum_ref[0] = possum_acc[...]
        npos_ref[0] = npos_acc[...]


def fused_loss_pallas(truths, labels_k, bpi, bto, bti, priors_cw_k, loc_k, conf_k,
                      *, tp, threshold, variance, num_real_priors):
    B, O, _ = truths.shape
    C = conf_k.shape[1]
    P_pad = conf_k.shape[2]

    kern = functools.partial(
        _fused_loss_kernel, threshold=float(threshold),
        var0=float(variance[0]), var1=float(variance[1]),
        num_real_priors=int(num_real_priors))

    return pl.pallas_call(
        kern,
        out_shape=(jax.ShapeDtypeStruct((B, 1, P_pad), jnp.float32),
                   jax.ShapeDtypeStruct((B, 1, 1), jnp.float32),
                   jax.ShapeDtypeStruct((B, 1, 1), jnp.float32),
                   jax.ShapeDtypeStruct((B, 1, 1), jnp.float32)),
        grid=(B, P_pad // tp),
        in_specs=[pl.BlockSpec((1, O, 4), lambda b, p: (b, 0, 0)),     # truths
                  pl.BlockSpec((1, O, 1), lambda b, p: (b, 0, 0)),     # labels
                  pl.BlockSpec((1, O, 1), lambda b, p: (b, 0, 0)),     # best_prior_idx
                  pl.BlockSpec((1, 1, tp), lambda b, p: (b, 0, p)),    # best_truth_overlap
                  pl.BlockSpec((1, 1, tp), lambda b, p: (b, 0, p)),    # best_truth_idx
                  pl.BlockSpec((4, tp), lambda b, p: (0, p)),          # priors cxcywh
                  pl.BlockSpec((1, 4, tp), lambda b, p: (b, 0, p)),    # loc preds
                  pl.BlockSpec((1, C, tp), lambda b, p: (b, 0, p))],   # conf logits
        out_specs=(pl.BlockSpec((1, 1, tp), lambda b, p: (b, 0, p)),
                   pl.BlockSpec((1, 1, 1), lambda b, p: (b, 0, 0)),
                   pl.BlockSpec((1, 1, 1), lambda b, p: (b, 0, 0)),
                   pl.BlockSpec((1, 1, 1), lambda b, p: (b, 0, 0))),
        scratch_shapes=[pltpu.VMEM((1, 1), jnp.float32),
                        pltpu.VMEM((1, 1), jnp.float32),
                        pltpu.VMEM((1, 1), jnp.float32)],
        compiler_params=pltpu.CompilerParams(
            dimension_semantics=("parallel", "arbitrary")),
    )(truths, labels_k, bpi, bto, bti, priors_cw_k, loc_k, conf_k)


# --------------------------------------------------------------------------
# Exact, sort-free k-th-value selection for hard-negative mining.
# --------------------------------------------------------------------------
def _kth_largest_nonneg(x, k):
    """Exact per-row k-th largest of a non-negative float32 (B, N) array.
    32-step binary search over the monotone IEEE-754 bit domain (no sort)."""
    bits = jax.lax.bitcast_convert_type(x, jnp.int32)
    kk = k[:, None]
    lo = jnp.zeros((x.shape[0], 1), jnp.int32)
    hi = jnp.max(bits, axis=1, keepdims=True)

    def body(_, carry):
        lo, hi = carry
        mid = lo + ((hi - lo + 1) >> 1)
        cnt = jnp.sum((bits >= mid).astype(jnp.int32), axis=1, keepdims=True)
        ok = cnt >= kk
        return jnp.where(ok, mid, lo), jnp.where(ok, hi, mid - 1)

    lo, _ = jax.lax.fori_loop(0, 32, body, (lo, hi))
    return jax.lax.bitcast_convert_type(lo, jnp.float32)          # (B, 1)


# --------------------------------------------------------------------------
# MultiBoxLoss
# --------------------------------------------------------------------------
class MultiBoxLoss:
    """JAX/Pallas re-implementation of the SSD MultiBoxLoss forward pass."""

    def __init__(self, num_classes, overlap_thresh, prior_for_matching, bkg_label,
                 neg_mining, neg_pos, neg_overlap, encode_target, use_gpu=True,
                 conf_stream_dtype=jnp.float32):
        self.use_gpu = use_gpu
        self.num_classes = num_classes
        self.threshold = overlap_thresh
        self.background_label = bkg_label
        self.encode_target = encode_target
        self.use_prior_for_matching = prior_for_matching
        self.do_neg_mining = neg_mining
        self.negpos_ratio = neg_pos
        self.neg_overlap = neg_overlap
        self.variance = cfg["variance"]
        # TODO(synk): auto-select bfloat16 conf streaming on v6e/v7x (keep f32 on v5e).
        self.conf_stream_dtype = conf_stream_dtype
        self._jit_forward = jax.jit(self._forward_impl)

    # ---- jitted forward: both pallas_calls + fused glue ----
    def _forward_impl(self, loc_data, conf_data, priors, targets):
        loc_data = loc_data.astype(jnp.float32)
        B, P, C = conf_data.shape
        priors = priors[:P, :].astype(jnp.float32)                # (P, 4) cxcywh
        truths = targets[:, :, :4].astype(jnp.float32)            # (B, O, 4) xyxy
        labels = targets[:, :, 4].astype(jnp.int32)               # (B, O)
        O = truths.shape[1]

        tp = _choose_prior_tile(P, C)
        P_pad = _round_up(P, tp)
        pad = P_pad - P

        # Padded priors: point-form copies are zero-area boxes far outside [0,1]
        # (IoU == 0 with every gt); cxcywh copies get w = h = 1 so the in-kernel
        # encode never divides by zero.  Padded lanes can never become positive
        # and their conf loss is zeroed in-kernel, so no output slicing is needed.
        priors_pf = point_form(priors)
        priors_pf_pad = jnp.pad(priors_pf, ((0, pad), (0, 0)), constant_values=2.0)
        priors_cw_pad = jnp.pad(priors, ((0, pad), (0, 0)), constant_values=1.0)
        priors_pf_k = jnp.transpose(priors_pf_pad, (1, 0))        # (4, P_pad)
        priors_cw_k = jnp.transpose(priors_cw_pad, (1, 0))        # (4, P_pad)

        # Lane-dense (P in lanes) relayout for loc / conf inside jit.
        loc_k = jnp.transpose(jnp.pad(loc_data, ((0, 0), (0, pad), (0, 0))),
                              (0, 2, 1))                          # (B, 4, P_pad)
        conf_k = jnp.transpose(
            jnp.pad(conf_data, ((0, 0), (0, pad), (0, 0))).astype(self.conf_stream_dtype),
            (0, 2, 1))                                            # (B, C, P_pad)
        labels_k = labels[:, :, None]                             # (B, O, 1)

        # ---- kernel 1: fused IoU + matching reductions ----
        bto, bti, bpi = match_pallas(truths, priors_pf_k, tp)

        # ---- kernel 2: override + conf_t + encode + smooth-L1 + per-prior CE ----
        lc, loss_l_img, pos_sum_img, num_pos_img = fused_loss_pallas(
            truths, labels_k, bpi, bto, bti, priors_cw_k, loc_k, conf_k,
            tp=tp, threshold=self.threshold, variance=self.variance,
            num_real_priors=P)

        lc = lc[:, 0, :]                          # (B, P_pad); 0 at positives/padding
        num_pos = num_pos_img[:, 0, 0]            # (B,)
        pos_sum = pos_sum_img[:, 0, 0]            # (B,)
        loss_l = jnp.sum(loss_l_img[:, 0, 0])

        # ---- hard negative mining: exact, sort-free top-num_neg sum ----
        num_neg = jnp.minimum(self.negpos_ratio * num_pos, float(P - 1))    # (B,)
        k = num_neg.astype(jnp.int32)
        kth = _kth_largest_nonneg(lc, jnp.maximum(k, 1))                    # (B, 1)
        gt_mask = lc > kth
        count_gt = jnp.sum(gt_mask.astype(jnp.float32), axis=1)             # (B,)
        neg_sum = (jnp.sum(jnp.where(gt_mask, lc, 0.0), axis=1)
                   + kth[:, 0] * (num_neg - count_gt))
        neg_sum = jnp.where(k > 0, neg_sum, 0.0)

        loss_c = jnp.sum(pos_sum + neg_sum)

        # NOTE: reference divides by N = num_pos.sum() even when it is 0 (inf/nan);
        # here N is clamped to >= 1 (documented divergence).
        N = jnp.maximum(jnp.sum(num_pos), 1.0)
        return loss_l / N, loss_c / N

    def forward(self, predictions, targets):
        loc_data, conf_data, priors = predictions
        return self._jit_forward(loc_data, conf_data, priors, targets)

    __call__ = forward


# --------------------------------------------------------------------------
# main
# --------------------------------------------------------------------------
if __name__ == "__main__":
    B, P, C, O = 2, 128, 8, 8   # batch, num_priors, num_classes, num_objs

    key = jax.random.PRNGKey(0)
    k1, k2, k3, k4, k5, k6, k7 = jax.random.split(key, 7)

    loc_data = 0.1 * jax.random.normal(k1, (B, P, 4), dtype=jnp.float32)
    conf_data = jax.random.normal(k2, (B, P, C), dtype=jnp.float32)

    # priors in (cx, cy, w, h) form
    cxcy = jax.random.uniform(k3, (P, 2), minval=0.1, maxval=0.9)
    wh = jax.random.uniform(k4, (P, 2), minval=0.05, maxval=0.3)
    priors = jnp.concatenate([cxcy, wh], axis=1).astype(jnp.float32)

    # targets: (B, O, 5) = [xmin, ymin, xmax, ymax, label]
    mins = jax.random.uniform(k5, (B, O, 2), minval=0.0, maxval=0.6)
    sizes = jax.random.uniform(k6, (B, O, 2), minval=0.05, maxval=0.35)
    tboxes = jnp.concatenate([mins, mins + sizes], axis=2)
    tlabels = jax.random.randint(k7, (B, O), 0, C - 1).astype(jnp.float32)
    targets = jnp.concatenate([tboxes, tlabels[:, :, None]], axis=2).astype(jnp.float32)

    criterion = MultiBoxLoss(num_classes=C, overlap_thresh=0.5,
                             prior_for_matching=True, bkg_label=0,
                             neg_mining=True, neg_pos=3, neg_overlap=0.5,
                             encode_target=False, use_gpu=False)

    loss_l, loss_c = criterion.forward((loc_data, conf_data, priors), targets)
    loss_l, loss_c = jax.block_until_ready((loss_l, loss_c))

    assert bool(jnp.isfinite(loss_l)) and bool(jnp.isfinite(loss_c))
    print("KERNEL_OK")
</pallas_src>

<mosaic_0001>
module attributes {stable_mosaic.version = 11 : i64} {
  func.func @_match_kernel(%arg0: i32, %arg1: i32, %arg2: memref<1x8x4xf32, #tpu.memory_space<vmem>>, %arg3: memref<4x128xf32, #tpu.memory_space<vmem>>, %arg4: memref<1x1x128xf32, #tpu.memory_space<vmem>>, %arg5: memref<1x1x128xi32, #tpu.memory_space<vmem>>, %arg6: memref<1x8x1xi32, #tpu.memory_space<vmem>>, %arg7: memref<8x1xf32, #tpu.memory_space<vmem>>) attributes {dimension_semantics = [#tpu.dimension_semantics<parallel>, #tpu.dimension_semantics<arbitrary>], iteration_bounds = array<i64: 2, 1>, scalar_prefetch = 0 : i64, scratch_operands = 1 : i64, tpu.core_type = #tpu.core_type<tc>, window_params = [{transform_indices = @transform_0, window_bounds = array<i64: 1, 8, 4>}, {transform_indices = @transform_1, window_bounds = array<i64: 4, 128>}, {transform_indices = @transform_2, window_bounds = array<i64: 1, 1, 128>}, {transform_indices = @transform_3, window_bounds = array<i64: 1, 1, 128>}, {transform_indices = @transform_4, window_bounds = array<i64: 1, 8, 1>}]} {
    %c0 = arith.constant 0 : index
    %c0_0 = arith.constant 0 : index
    %c0_1 = arith.constant 0 : index
    %0 = vector.load %arg2[%c0, %c0_0, %c0_1] : memref<1x8x4xf32, #tpu.memory_space<vmem>>, vector<1x8x4xf32>
    %1 = vector.shape_cast %0 : vector<1x8x4xf32> to vector<8x4xf32>
    %2 = vector.extract_strided_slice %1 {offsets = [0, 0], sizes = [8, 1], strides = [1, 1]} : vector<8x4xf32> to vector<8x1xf32>
    %3 = vector.extract_strided_slice %1 {offsets = [0, 1], sizes = [8, 1], strides = [1, 1]} : vector<8x4xf32> to vector<8x1xf32>
    %4 = vector.extract_strided_slice %1 {offsets = [0, 2], sizes = [8, 1], strides = [1, 1]} : vector<8x4xf32> to vector<8x1xf32>
    %5 = vector.extract_strided_slice %1 {offsets = [0, 3], sizes = [8, 1], strides = [1, 1]} : vector<8x4xf32> to vector<8x1xf32>
    %c0_2 = arith.constant 0 : index
    %c0_3 = arith.constant 0 : index
    %6 = vector.load %arg3[%c0_2, %c0_3] : memref<4x128xf32, #tpu.memory_space<vmem>>, vector<1x128xf32>
    %c1 = arith.constant 1 : index
    %c0_4 = arith.constant 0 : index
    %7 = vector.load %arg3[%c1, %c0_4] : memref<4x128xf32, #tpu.memory_space<vmem>>, vector<1x128xf32>
    %c2 = arith.constant 2 : index
    %c0_5 = arith.constant 0 : index
    %8 = vector.load %arg3[%c2, %c0_5] : memref<4x128xf32, #tpu.memory_space<vmem>>, vector<1x128xf32>
    %c3 = arith.constant 3 : index
    %c0_6 = arith.constant 0 : index
    %9 = vector.load %arg3[%c3, %c0_6] : memref<4x128xf32, #tpu.memory_space<vmem>>, vector<1x128xf32>
    %10 = vector.broadcast %4 : vector<8x1xf32> to vector<8x128xf32>
    %11 = vector.broadcast %8 : vector<1x128xf32> to vector<8x128xf32>
    %12 = arith.minimumf %10, %11 : vector<8x128xf32>
    %13 = vector.broadcast %2 : vector<8x1xf32> to vector<8x128xf32>
    %14 = vector.broadcast %6 : vector<1x128xf32> to vector<8x128xf32>
    %15 = arith.maximumf %13, %14 : vector<8x128xf32>
    %16 = arith.subf %12, %15 : vector<8x128xf32>
    %cst = arith.constant 0.000000e+00 : f32
    %17 = vector.broadcast %cst : f32 to vector<8x128xf32>
    %18 = arith.maximumf %16, %17 : vector<8x128xf32>
    %19 = vector.broadcast %5 : vector<8x1xf32> to vector<8x128xf32>
    %20 = vector.broadcast %9 : vector<1x128xf32> to vector<8x128xf32>
    %21 = arith.minimumf %19, %20 : vector<8x128xf32>
    %22 = vector.broadcast %3 : vector<8x1xf32> to vector<8x128xf32>
    %23 = vector.broadcast %7 : vector<1x128xf32> to vector<8x128xf32>
    %24 = arith.maximumf %22, %23 : vector<8x128xf32>
    %25 = arith.subf %21, %24 : vector<8x128xf32>
    %cst_7 = arith.constant 0.000000e+00 : f32
    %26 = vector.broadcast %cst_7 : f32 to vector<8x128xf32>
    %27 = arith.maximumf %25, %26 : vector<8x128xf32>
    %28 = arith.mulf %18, %27 : vector<8x128xf32>
    %29 = arith.subf %4, %2 : vector<8x1xf32>
    %30 = arith.subf %5, %3 : vector<8x1xf32>
    %31 = arith.mulf %29, %30 : vector<8x1xf32>
    %32 = arith.subf %8, %6 : vector<1x128xf32>
    %33 = arith.subf %9, %7 : vector<1x128xf32>
    %34 = arith.mulf %32, %33 : vector<1x128xf32>
    %35 = vector.broadcast %31 : vector<8x1xf32> to vector<8x128xf32>
    %36 = vector.broadcast %34 : vector<1x128xf32> to vector<8x128xf32>
    %37 = arith.addf %35, %36 : vector<8x128xf32>
    %38 = arith.subf %37, %28 : vector<8x128xf32>
    %cst_8 = arith.constant 9.99999996E-13 : f32
    %39 = vector.broadcast %cst_8 : f32 to vector<8x128xf32>
    %40 = arith.maximumf %38, %39 : vector<8x128xf32>
    %41 = arith.divf %28, %40 : vector<8x128xf32>
    %42 = tpu.iota {dimensions = array<i32: 0>} : vector<8x1xi32>
    %43 = tpu.iota {dimensions = array<i32: 1>} : vector<1x128xi32>
    %cst_9 = arith.constant dense<0xFF800000> : vector<128xf32>
    %44 = vector.multi_reduction <maximumf>, %41, %cst_9 [0] : vector<8x128xf32> to vector<128xf32>
    %45 = vector.shape_cast %44 : vector<128xf32> to vector<1x128xf32>
    %46 = vector.broadcast %45 : vector<1x128xf32> to vector<8x128xf32>
    %47 = arith.cmpf oeq, %41, %46 : vector<8x128xf32>
    %c8_i32 = arith.constant 8 : i32
    %48 = vector.shape_cast %42 : vector<8x1xi32> to vector<8x1xi32>
    %49 = vector.broadcast %48 : vector<8x1xi32> to vector<8x128xi32>
    %50 = vector.broadcast %c8_i32 : i32 to vector<8x128xi32>
    %51 = arith.select %47, %49, %50 : vector<8x128xi1>, vector<8x128xi32>
    %cst_10 = arith.constant dense<2147483647> : vector<128xi32>
    %52 = vector.multi_reduction <minsi>, %51, %cst_10 [0] : vector<8x128xi32> to vector<128xi32>
    %53 = vector.shape_cast %52 : vector<128xi32> to vector<1x128xi32>
    %c0_11 = arith.constant 0 : index
    %c0_12 = arith.constant 0 : index
    %c0_13 = arith.constant 0 : index
    %54 = vector.load %arg4[%c0_11, %c0_12, %c0_13] : memref<1x1x128xf32, #tpu.memory_space<vmem>>, vector<1x1x128xf32>
    %55 = vector.shape_cast %54 : vector<1x1x128xf32> to vector<1x128xf32>
    %56 = vector.shape_cast %45 : vector<1x128xf32> to vector<1x1x128xf32>
    tpu.vector_store %arg4[%c0_11, %c0_12, %c0_13], %56 {strides = array<i32>} : memref<1x1x128xf32, #tpu.memory_space<vmem>>, vector<1x1x128xf32>,
    %c0_14 = arith.constant 0 : index
    %c0_15 = arith.constant 0 : index
    %c0_16 = arith.constant 0 : index
    %57 = vector.load %arg5[%c0_14, %c0_15, %c0_16] : memref<1x1x128xi32, #tpu.memory_space<vmem>>, vector<1x1x128xi32>
    %58 = vector.shape_cast %57 : vector<1x1x128xi32> to vector<1x128xi32>
    %59 = vector.shape_cast %53 : vector<1x128xi32> to vector<1x1x128xi32>
    tpu.vector_store %arg5[%c0_14, %c0_15, %c0_16], %59 {strides = array<i32>} : memref<1x1x128xi32, #tpu.memory_space<vmem>>, vector<1x1x128xi32>,
    %cst_17 = arith.constant dense<0xFF800000> : vector<8xf32>
    %60 = vector.multi_reduction <maximumf>, %41, %cst_17 [1] : vector<8x128xf32> to vector<8xf32>
    %61 = vector.shape_cast %60 : vector<8xf32> to vector<8x1xf32>
    %62 = vector.broadcast %61 : vector<8x1xf32> to vector<8x128xf32>
    %63 = arith.cmpf oeq, %41, %62 : vector<8x128xf32>
    %c128_i32 = arith.constant 128 : i32
    %64 = vector.shape_cast %43 : vector<1x128xi32> to vector<1x128xi32>
    %65 = vector.broadcast %64 : vector<1x128xi32> to vector<8x128xi32>
    %66 = vector.broadcast %c128_i32 : i32 to vector<8x128xi32>
    %67 = arith.select %63, %65, %66 : vector<8x128xi1>, vector<8x128xi32>
    %cst_18 = arith.constant dense<2147483647> : vector<8xi32>
    %68 = vector.multi_reduction <minsi>, %67, %cst_18 [1] : vector<8x128xi32> to vector<8xi32>
    %69 = vector.shape_cast %68 : vector<8xi32> to vector<8x1xi32>
    %c128_i32_19 = arith.constant 128 : i32
    %70 = arith.muli %arg1, %c128_i32_19 : i32
    %71 = vector.broadcast %70 : i32 to vector<8x1xi32>
    %72 = arith.addi %69, %71 : vector<8x1xi32>
    %c0_i32 = arith.constant 0 : i32
    %73 = arith.cmpi eq, %arg1, %c0_i32 : i32
    %74 = arith.extui %73 : i1 to i32
    %c0_i32_20 = arith.constant 0 : i32
    %75 = arith.cmpi ne, %74, %c0_i32_20 : i32
    scf.if %75 {
      %cst_33 = arith.constant -1.000000e+00 : f32
      %87 = vector.broadcast %cst_33 : f32 to vector<8x1xf32>
      %c0_34 = arith.constant 0 : index
      %c0_35 = arith.constant 0 : index
      %88 = vector.load %arg7[%c0_34, %c0_35] : memref<8x1xf32, #tpu.memory_space<vmem>>, vector<8x1xf32>
      tpu.vector_store %arg7[%c0_34, %c0_35], %87 {strides = array<i32>} : memref<8x1xf32, #tpu.memory_space<vmem>>, vector<8x1xf32>,
      %c0_i32_36 = arith.constant 0 : i32
      %89 = vector.broadcast %c0_i32_36 : i32 to vector<8x1xi32>
      %c0_37 = arith.constant 0 : index
      %c0_38 = arith.constant 0 : index
      %c0_39 = arith.constant 0 : index
      %90 = vector.load %arg6[%c0_37, %c0_38, %c0_39] : memref<1x8x1xi32, #tpu.memory_space<vmem>>, vector<1x8x1xi32>
      %91 = vector.shape_cast %90 : vector<1x8x1xi32> to vector<8x1xi32>
      %92 = vector.shape_cast %89 : vector<8x1xi32> to vector<1x8x1xi32>
      tpu.vector_store %arg6[%c0_37, %c0_38, %c0_39], %92 {strides = array<i32>} : memref<1x8x1xi32, #tpu.memory_space<vmem>>, vector<1x8x1xi32>,
    } else {
    }
    %c0_21 = arith.constant 0 : index
    %c0_22 = arith.constant 0 : index
    %76 = vector.load %arg7[%c0_21, %c0_22] : memref<8x1xf32, #tpu.memory_space<vmem>>, vector<8x1xf32>
    %77 = arith.cmpf ogt, %61, %76 : vector<8x1xf32>
    %c0_23 = arith.constant 0 : index
    %c0_24 = arith.constant 0 : index
    %c0_25 = arith.constant 0 : index
    %78 = vector.load %arg6[%c0_23, %c0_24, %c0_25] : memref<1x8x1xi32, #tpu.memory_space<vmem>>, vector<1x8x1xi32>
    %79 = vector.shape_cast %78 : vector<1x8x1xi32> to vector<8x1xi32>
    %80 = arith.select %77, %72, %79 : vector<8x1xi1>, vector<8x1xi32>
    %c0_26 = arith.constant 0 : index
    %c0_27 = arith.constant 0 : index
    %c0_28 = arith.constant 0 : index
    %81 = vector.load %arg6[%c0_26, %c0_27, %c0_28] : memref<1x8x1xi32, #tpu.memory_space<vmem>>, vector<1x8x1xi32>
    %82 = vector.shape_cast %81 : vector<1x8x1xi32> to vector<8x1xi32>
    %83 = vector.shape_cast %80 : vector<8x1xi32> to vector<1x8x1xi32>
    tpu.vector_store %arg6[%c0_26, %c0_27, %c0_28], %83 {strides = array<i32>} : memref<1x8x1xi32, #tpu.memory_space<vmem>>, vector<1x8x1xi32>,
    %c0_29 = arith.constant 0 : index
    %c0_30 = arith.constant 0 : index
    %84 = vector.load %arg7[%c0_29, %c0_30] : memref<8x1xf32, #tpu.memory_space<vmem>>, vector<8x1xf32>
    %85 = arith.maximumf %61, %84 : vector<8x1xf32>
    %c0_31 = arith.constant 0 : index
    %c0_32 = arith.constant 0 : index
    %86 = vector.load %arg7[%c0_31, %c0_32] : memref<8x1xf32, #tpu.memory_space<vmem>>, vector<8x1xf32>
    tpu.vector_store %arg7[%c0_31, %c0_32], %85 {strides = array<i32>} : memref<8x1xf32, #tpu.memory_space<vmem>>, vector<8x1xf32>,
    return
  }
  func.func @transform_0(%arg0: i32, %arg1: i32) -> (i32, i32, i32) {
    %c0_i32 = arith.constant 0 : i32
    %c0_i32_0 = arith.constant 0 : i32
    %c0_i32_1 = arith.constant 0 : i32
    return %arg0, %c0_i32, %c0_i32_0 : i32, i32, i32
  }
  func.func @transform_1(%arg0: i32, %arg1: i32) -> (i32, i32) {
    %c0_i32 = arith.constant 0 : i32
    %c0_i32_0 = arith.constant 0 : i32
    return %c0_i32, %arg1 : i32, i32
  }
  func.func @transform_2(%arg0: i32, %arg1: i32) -> (i32, i32, i32) {
    %c0_i32 = arith.constant 0 : i32
    %c0_i32_0 = arith.constant 0 : i32
    return %arg0, %c0_i32, %arg1 : i32, i32, i32
  }
  func.func @transform_3(%arg0: i32, %arg1: i32) -> (i32, i32, i32) {
    %c0_i32 = arith.constant 0 : i32
    %c0_i32_0 = arith.constant 0 : i32
    return %arg0, %c0_i32, %arg1 : i32, i32, i32
  }
  func.func @transform_4(%arg0: i32, %arg1: i32) -> (i32, i32, i32) {
    %c0_i32 = arith.constant 0 : i32
    %c0_i32_0 = arith.constant 0 : i32
    %c0_i32_1 = arith.constant 0 : i32
    return %arg0, %c0_i32, %c0_i32_0 : i32, i32, i32
  }
}

module attributes {stable_mosaic.version = 11 : i64} {
  func.func @_fused_loss_kernel(%arg0: i32, %arg1: i32, %arg2: memref<1x8x4xf32, #tpu.memory_space<vmem>>, %arg3: memref<1x8x1xi32, #tpu.memory_space<vmem>>, %arg4: memref<1x8x1xi32, #tpu.memory_space<vmem>>, %arg5: memref<1x1x128xf32, #tpu.memory_space<vmem>>, %arg6: memref<1x1x128xi32, #tpu.memory_space<vmem>>, %arg7: memref<4x128xf32, #tpu.memory_space<vmem>>, %arg8: memref<1x4x128xf32, #tpu.memory_space<vmem>>, %arg9: memref<1x8x128xf32, #tpu.memory_space<vmem>>, %arg10: memref<1x1x128xf32, #tpu.memory_space<vmem>>, %arg11: memref<1x1x1xf32, #tpu.memory_space<vmem>>, %arg12: memref<1x1x1xf32, #tpu.memory_space<vmem>>, %arg13: memref<1x1x1xf32, #tpu.memory_space<vmem>>, %arg14: memref<1x1xf32, #tpu.memory_space<vmem>>, %arg15: memref<1x1xf32, #tpu.memory_space<vmem>>, %arg16: memref<1x1xf32, #tpu.memory_space<vmem>>) attributes {dimension_semantics = [#tpu.dimension_semantics<parallel>, #tpu.dimension_semantics<arbitrary>], iteration_bounds = array<i64: 2, 1>, scalar_prefetch = 0 : i64, scratch_operands = 3 : i64, tpu.core_type = #tpu.core_type<tc>, window_params = [{transform_indices = @transform_0, window_bounds = array<i64: 1, 8, 4>}, {transform_indices = @transform_1, window_bounds = array<i64: 1, 8, 1>}, {transform_indices = @transform_2, window_bounds = array<i64: 1, 8, 1>}, {transform_indices = @transform_3, window_bounds = array<i64: 1, 1, 128>}, {transform_indices = @transform_4, window_bounds = array<i64: 1, 1, 128>}, {transform_indices = @transform_5, window_bounds = array<i64: 4, 128>}, {transform_indices = @transform_6, window_bounds = array<i64: 1, 4, 128>}, {transform_indices = @transform_7, window_bounds = array<i64: 1, 8, 128>}, {transform_indices = @transform_8, window_bounds = array<i64: 1, 1, 128>}, {transform_indices = @transform_9, window_bounds = array<i64: 1, 1, 1>}, {transform_indices = @transform_10, window_bounds = array<i64: 1, 1, 1>}, {transform_indices = @transform_11, window_bounds = array<i64: 1, 1, 1>}]} {
    %c0_i32 = arith.constant 0 : i32
    %0 = arith.cmpi eq, %arg1, %c0_i32 : i32
    %1 = arith.extui %0 : i1 to i32
    %c0_i32_0 = arith.constant 0 : i32
    %2 = arith.cmpi ne, %1, %c0_i32_0 : i32
    scf.if %2 {
      %cst_86 = arith.constant 0.000000e+00 : f32
      %205 = vector.broadcast %cst_86 : f32 to vector<1x1xf32>
      %c0_87 = arith.constant 0 : index
      %c0_88 = arith.constant 0 : index
      %206 = vector.load %arg14[%c0_87, %c0_88] : memref<1x1xf32, #tpu.memory_space<vmem>>, vector<1x1xf32>
      tpu.vector_store %arg14[%c0_87, %c0_88], %205 {strides = array<i32>} : memref<1x1xf32, #tpu.memory_space<vmem>>, vector<1x1xf32>,
      %cst_89 = arith.constant 0.000000e+00 : f32
      %207 = vector.broadcast %cst_89 : f32 to vector<1x1xf32>
      %c0_90 = arith.constant 0 : index
      %c0_91 = arith.constant 0 : index
      %208 = vector.load %arg15[%c0_90, %c0_91] : memref<1x1xf32, #tpu.memory_space<vmem>>, vector<1x1xf32>
      tpu.vector_store %arg15[%c0_90, %c0_91], %207 {strides = array<i32>} : memref<1x1xf32, #tpu.memory_space<vmem>>, vector<1x1xf32>,
      %cst_92 = arith.constant 0.000000e+00 : f32
      %209 = vector.broadcast %cst_92 : f32 to vector<1x1xf32>
      %c0_93 = arith.constant 0 : index
      %c0_94 = arith.constant 0 : index
      %210 = vector.load %arg16[%c0_93, %c0_94] : memref<1x1xf32, #tpu.memory_space<vmem>>, vector<1x1xf32>
      tpu.vector_store %arg16[%c0_93, %c0_94], %209 {strides = array<i32>} : memref<1x1xf32, #tpu.memory_space<vmem>>, vector<1x1xf32>,
    } else {
    }
    %3 = tpu.iota {dimensions = array<i32: 1>} : vector<1x128xi32>
    %c128_i32 = arith.constant 128 : i32
    %4 = arith.muli %arg1, %c128_i32 : i32
    %5 = vector.broadcast %4 : i32 to vector<1x128xi32>
    %6 = arith.addi %3, %5 : vector<1x128xi32>
    %7 = tpu.iota {dimensions = array<i32: 0>} : vector<8x1xi32>
    %c0 = arith.constant 0 : index
    %c0_1 = arith.constant 0 : index
    %c0_2 = arith.constant 0 : index
    %8 = vector.load %arg4[%c0, %c0_1, %c0_2] : memref<1x8x1xi32, #tpu.memory_space<vmem>>, vector<1x8x1xi32>
    %9 = vector.shape_cast %8 : vector<1x8x1xi32> to vector<8x1xi32>
    %10 = vector.broadcast %6 : vector<1x128xi32> to vector<8x128xi32>
    %11 = vector.broadcast %9 : vector<8x1xi32> to vector<8x128xi32>
    %12 = arith.cmpi eq, %10, %11 : vector<8x128xi32>
    %c-1_i32 = arith.constant -1 : i32
    %13 = vector.shape_cast %7 : vector<8x1xi32> to vector<8x1xi32>
    %14 = vector.broadcast %13 : vector<8x1xi32> to vector<8x128xi32>
    %15 = vector.broadcast %c-1_i32 : i32 to vector<8x128xi32>
    %16 = arith.select %12, %14, %15 : vector<8x128xi1>, vector<8x128xi32>
    %cst = arith.constant dense<-2147483648> : vector<128xi32>
    %17 = vector.multi_reduction <maxsi>, %16, %cst [0] : vector<8x128xi32> to vector<128xi32>
    %18 = vector.shape_cast %17 : vector<128xi32> to vector<1x128xi32>
    %c0_i32_3 = arith.constant 0 : i32
    %19 = vector.broadcast %c0_i32_3 : i32 to vector<1x128xi32>
    %20 = arith.cmpi sge, %18, %19 : vector<1x128xi32>
    %c0_4 = arith.constant 0 : index
    %c0_5 = arith.constant 0 : index
    %c0_6 = arith.constant 0 : index
    %21 = vector.load %arg6[%c0_4, %c0_5, %c0_6] : memref<1x1x128xi32, #tpu.memory_space<vmem>>, vector<1x1x128xi32>
    %22 = vector.shape_cast %21 : vector<1x1x128xi32> to vector<1x128xi32>
    %23 = arith.select %20, %18, %22 : vector<1x128xi1>, vector<1x128xi32>
    %c0_7 = arith.constant 0 : index
    %c0_8 = arith.constant 0 : index
    %c0_9 = arith.constant 0 : index
    %24 = vector.load %arg5[%c0_7, %c0_8, %c0_9] : memref<1x1x128xf32, #tpu.memory_space<vmem>>, vector<1x1x128xf32>
    %25 = vector.shape_cast %24 : vector<1x1x128xf32> to vector<1x128xf32>
    %cst_10 = arith.constant 2.000000e+00 : f32
    %26 = vector.broadcast %cst_10 : f32 to vector<1x128xf32>
    %27 = arith.select %20, %26, %25 : vector<1x128xi1>, vector<1x128xf32>
    %28 = vector.broadcast %23 : vector<1x128xi32> to vector<8x128xi32>
    %29 = vector.broadcast %7 : vector<8x1xi32> to vector<8x128xi32>
    %30 = arith.cmpi eq, %28, %29 : vector<8x128xi32>
    %31 = arith.extui %30 : vector<8x128xi1> to vector<8x128xi32>
    %32 = arith.sitofp %31 : vector<8x128xi32> to vector<8x128xf32>
    %c0_11 = arith.constant 0 : index
    %c0_12 = arith.constant 0 : index
    %c0_13 = arith.constant 0 : index
    %33 = vector.load %arg2[%c0_11, %c0_12, %c0_13] : memref<1x8x4xf32, #tpu.memory_space<vmem>>, vector<1x8x4xf32>
    %34 = vector.shape_cast %33 : vector<1x8x4xf32> to vector<8x4xf32>
    %35 = vector.extract_strided_slice %34 {offsets = [0, 0], sizes = [8, 1], strides = [1, 1]} : vector<8x4xf32> to vector<8x1xf32>
    %36 = vector.broadcast %35 : vector<8x1xf32> to vector<8x128xf32>
    %37 = arith.mulf %32, %36 : vector<8x128xf32>
    %cst_14 = arith.constant dense<0.000000e+00> : vector<128xf32>
    %38 = vector.multi_reduction <add>, %37, %cst_14 [0] : vector<8x128xf32> to vector<128xf32>
    %39 = vector.shape_cast %38 : vector<128xf32> to vector<1x128xf32>
    %40 = vector.extract_strided_slice %34 {offsets = [0, 1], sizes = [8, 1], strides = [1, 1]} : vector<8x4xf32> to vector<8x1xf32>
    %41 = vector.broadcast %40 : vector<8x1xf32> to vector<8x128xf32>
    %42 = arith.mulf %32, %41 : vector<8x128xf32>
    %cst_15 = arith.constant dense<0.000000e+00> : vector<128xf32>
    %43 = vector.multi_reduction <add>, %42, %cst_15 [0] : vector<8x128xf32> to vector<128xf32>
    %44 = vector.shape_cast %43 : vector<128xf32> to vector<1x128xf32>
    %45 = vector.extract_strided_slice %34 {offsets = [0, 2], sizes = [8, 1], strides = [1, 1]} : vector<8x4xf32> to vector<8x1xf32>
    %46 = vector.broadcast %45 : vector<8x1xf32> to vector<8x128xf32>
    %47 = arith.mulf %32, %46 : vector<8x128xf32>
    %cst_16 = arith.constant dense<0.000000e+00> : vector<128xf32>
    %48 = vector.multi_reduction <add>, %47, %cst_16 [0] : vector<8x128xf32> to vector<128xf32>
    %49 = vector.shape_cast %48 : vector<128xf32> to vector<1x128xf32>
    %50 = vector.extract_strided_slice %34 {offsets = [0, 3], sizes = [8, 1], strides = [1, 1]} : vector<8x4xf32> to vector<8x1xf32>
    %51 = vector.broadcast %50 : vector<8x1xf32> to vector<8x128xf32>
    %52 = arith.mulf %32, %51 : vector<8x128xf32>
    %cst_17 = arith.constant dense<0.000000e+00> : vector<128xf32>
    %53 = vector.multi_reduction <add>, %52, %cst_17 [0] : vector<8x128xf32> to vector<128xf32>
    %54 = vector.shape_cast %53 : vector<128xf32> to vector<1x128xf32>
    %c0_18 = arith.constant 0 : index
    %c0_19 = arith.constant 0 : index
    %c0_20 = arith.constant 0 : index
    %55 = vector.load %arg3[%c0_18, %c0_19, %c0_20] : memref<1x8x1xi32, #tpu.memory_space<vmem>>, vector<1x8x1xi32>
    %56 = vector.shape_cast %55 : vector<1x8x1xi32> to vector<8x1xi32>
    %c0_i32_21 = arith.constant 0 : i32
    %57 = vector.shape_cast %56 : vector<8x1xi32> to vector<8x1xi32>
    %58 = vector.broadcast %57 : vector<8x1xi32> to vector<8x128xi32>
    %59 = vector.broadcast %c0_i32_21 : i32 to vector<8x128xi32>
    %60 = arith.select %30, %58, %59 : vector<8x128xi1>, vector<8x128xi32>
    %cst_22 = arith.constant dense<0> : vector<128xi32>
    %61 = vector.multi_reduction <add>, %60, %cst_22 [0] : vector<8x128xi32> to vector<128xi32>
    %62 = vector.shape_cast %61 : vector<128xi32> to vector<1x128xi32>
    %cst_23 = arith.constant 5.000000e-01 : f32
    %63 = vector.broadcast %cst_23 : f32 to vector<1x128xf32>
    %64 = arith.cmpf olt, %27, %63 : vector<1x128xf32>
    %c1_i32 = arith.constant 1 : i32
    %65 = vector.broadcast %c1_i32 : i32 to vector<1x128xi32>
    %66 = arith.addi %62, %65 : vector<1x128xi32>
    %c0_i32_24 = arith.constant 0 : i32
    %67 = vector.broadcast %c0_i32_24 : i32 to vector<1x128xi32>
    %68 = arith.select %64, %67, %66 : vector<1x128xi1>, vector<1x128xi32>
    %c0_i32_25 = arith.constant 0 : i32
    %69 = vector.broadcast %c0_i32_25 : i32 to vector<1x128xi32>
    %70 = arith.cmpi sgt, %68, %69 : vector<1x128xi32>
    %c0_26 = arith.constant 0 : index
    %c0_27 = arith.constant 0 : index
    %71 = vector.load %arg7[%c0_26, %c0_27] : memref<4x128xf32, #tpu.memory_space<vmem>>, vector<1x128xf32>
    %c1 = arith.constant 1 : index
    %c0_28 = arith.constant 0 : index
    %72 = vector.load %arg7[%c1, %c0_28] : memref<4x128xf32, #tpu.memory_space<vmem>>, vector<1x128xf32>
    %c2 = arith.constant 2 : index
    %c0_29 = arith.constant 0 : index
    %73 = vector.load %arg7[%c2, %c0_29] : memref<4x128xf32, #tpu.memory_space<vmem>>, vector<1x128xf32>
    %c3 = arith.constant 3 : index
    %c0_30 = arith.constant 0 : index
    %74 = vector.load %arg7[%c3, %c0_30] : memref<4x128xf32, #tpu.memory_space<vmem>>, vector<1x128xf32>
    %75 = arith.addf %39, %49 : vector<1x128xf32>
    %cst_31 = arith.constant 5.000000e-01 : f32
    %76 = vector.broadcast %cst_31 : f32 to vector<1x128xf32>
    %77 = arith.mulf %75, %76 : vector<1x128xf32>
    %78 = arith.subf %77, %71 : vector<1x128xf32>
    %cst_32 = arith.constant 1.000000e-01 : f32
    %79 = vector.broadcast %cst_32 : f32 to vector<1x128xf32>
    %80 = arith.mulf %79, %73 : vector<1x128xf32>
    %81 = arith.divf %78, %80 : vector<1x128xf32>
    %82 = arith.addf %44, %54 : vector<1x128xf32>
    %cst_33 = arith.constant 5.000000e-01 : f32
    %83 = vector.broadcast %cst_33 : f32 to vector<1x128xf32>
    %84 = arith.mulf %82, %83 : vector<1x128xf32>
    %85 = arith.subf %84, %72 : vector<1x128xf32>
    %cst_34 = arith.constant 1.000000e-01 : f32
    %86 = vector.broadcast %cst_34 : f32 to vector<1x128xf32>
    %87 = arith.mulf %86, %74 : vector<1x128xf32>
    %88 = arith.divf %85, %87 : vector<1x128xf32>
    %89 = arith.subf %49, %39 : vector<1x128xf32>
    %90 = arith.divf %89, %73 : vector<1x128xf32>
    %cst_35 = arith.constant 9.99999996E-13 : f32
    %91 = vector.broadcast %cst_35 : f32 to vector<1x128xf32>
    %92 = arith.maximumf %90, %91 : vector<1x128xf32>
    %93 = math.log %92 : vector<1x128xf32>
    %cst_36 = arith.constant 2.000000e-01 : f32
    %94 = vector.broadcast %cst_36 : f32 to vector<1x128xf32>
    %95 = arith.divf %93, %94 : vector<1x128xf32>
    %96 = arith.subf %54, %44 : vector<1x128xf32>
    %97 = arith.divf %96, %74 : vector<1x128xf32>
    %cst_37 = arith.constant 9.99999996E-13 : f32
    %98 = vector.broadcast %cst_37 : f32 to vector<1x128xf32>
    %99 = arith.maximumf %97, %98 : vector<1x128xf32>
    %100 = math.log %99 : vector<1x128xf32>
    %cst_38 = arith.constant 2.000000e-01 : f32
    %101 = vector.broadcast %cst_38 : f32 to vector<1x128xf32>
    %102 = arith.divf %100, %101 : vector<1x128xf32>
    %c0_39 = arith.constant 0 : index
    %c0_40 = arith.constant 0 : index
    %c0_41 = arith.constant 0 : index
    %103 = vector.load %arg8[%c0_39, %c0_40, %c0_41] : memref<1x4x128xf32, #tpu.memory_space<vmem>>, vector<1x4x128xf32>
    %104 = vector.shape_cast %103 : vector<1x4x128xf32> to vector<4x128xf32>
    %105 = vector.extract_strided_slice %104 {offsets = [0, 0], sizes = [1, 128], strides = [1, 1]} : vector<4x128xf32> to vector<1x128xf32>
    %106 = arith.subf %105, %81 : vector<1x128xf32>
    %107 = math.absf %106 : vector<1x128xf32>
    %cst_42 = arith.constant 1.000000e+00 : f32
    %108 = vector.broadcast %cst_42 : f32 to vector<1x128xf32>
    %109 = arith.cmpf olt, %107, %108 : vector<1x128xf32>
    %cst_43 = arith.constant 5.000000e-01 : f32
    %110 = vector.broadcast %cst_43 : f32 to vector<1x128xf32>
    %111 = arith.mulf %110, %106 : vector<1x128xf32>
    %112 = arith.mulf %111, %106 : vector<1x128xf32>
    %cst_44 = arith.constant 5.000000e-01 : f32
    %113 = vector.broadcast %cst_44 : f32 to vector<1x128xf32>
    %114 = arith.subf %107, %113 : vector<1x128xf32>
    %115 = arith.select %109, %112, %114 : vector<1x128xi1>, vector<1x128xf32>
    %116 = vector.extract_strided_slice %104 {offsets = [1, 0], sizes = [1, 128], strides = [1, 1]} : vector<4x128xf32> to vector<1x128xf32>
    %117 = arith.subf %116, %88 : vector<1x128xf32>
    %118 = math.absf %117 : vector<1x128xf32>
    %cst_45 = arith.constant 1.000000e+00 : f32
    %119 = vector.broadcast %cst_45 : f32 to vector<1x128xf32>
    %120 = arith.cmpf olt, %118, %119 : vector<1x128xf32>
    %cst_46 = arith.constant 5.000000e-01 : f32
    %121 = vector.broadcast %cst_46 : f32 to vector<1x128xf32>
    %122 = arith.mulf %121, %117 : vector<1x128xf32>
    %123 = arith.mulf %122, %117 : vector<1x128xf32>
    %cst_47 = arith.constant 5.000000e-01 : f32
    %124 = vector.broadcast %cst_47 : f32 to vector<1x128xf32>
    %125 = arith.subf %118, %124 : vector<1x128xf32>
    %126 = arith.select %120, %123, %125 : vector<1x128xi1>, vector<1x128xf32>
    %127 = arith.addf %115, %126 : vector<1x128xf32>
    %128 = vector.extract_strided_slice %104 {offsets = [2, 0], sizes = [1, 128], strides = [1, 1]} : vector<4x128xf32> to vector<1x128xf32>
    %129 = arith.subf %128, %95 : vector<1x128xf32>
    %130 = math.absf %129 : vector<1x128xf32>
    %cst_48 = arith.constant 1.000000e+00 : f32
    %131 = vector.broadcast %cst_48 : f32 to vector<1x128xf32>
    %132 = arith.cmpf olt, %130, %131 : vector<1x128xf32>
    %cst_49 = arith.constant 5.000000e-01 : f32
    %133 = vector.broadcast %cst_49 : f32 to vector<1x128xf32>
    %134 = arith.mulf %133, %129 : vector<1x128xf32>
    %135 = arith.mulf %134, %129 : vector<1x128xf32>
    %cst_50 = arith.constant 5.000000e-01 : f32
    %136 = vector.broadcast %cst_50 : f32 to vector<1x128xf32>
    %137 = arith.subf %130, %136 : vector<1x128xf32>
    %138 = arith.select %132, %135, %137 : vector<1x128xi1>, vector<1x128xf32>
    %139 = arith.addf %127, %138 : vector<1x128xf32>
    %140 = vector.extract_strided_slice %104 {offsets = [3, 0], sizes = [1, 128], strides = [1, 1]} : vector<4x128xf32> to vector<1x128xf32>
    %141 = arith.subf %140, %102 : vector<1x128xf32>
    %142 = math.absf %141 : vector<1x128xf32>
    %cst_51 = arith.constant 1.000000e+00 : f32
    %143 = vector.broadcast %cst_51 : f32 to vector<1x128xf32>
    %144 = arith.cmpf olt, %142, %143 : vector<1x128xf32>
    %cst_52 = arith.constant 5.000000e-01 : f32
    %145 = vector.broadcast %cst_52 : f32 to vector<1x128xf32>
    %146 = arith.mulf %145, %141 : vector<1x128xf32>
    %147 = arith.mulf %146, %141 : vector<1x128xf32>
    %cst_53 = arith.constant 5.000000e-01 : f32
    %148 = vector.broadcast %cst_53 : f32 to vector<1x128xf32>
    %149 = arith.subf %142, %148 : vector<1x128xf32>
    %150 = arith.select %144, %147, %149 : vector<1x128xi1>, vector<1x128xf32>
    %151 = arith.addf %139, %150 : vector<1x128xf32>
    %c0_54 = arith.constant 0 : index
    %c0_55 = arith.constant 0 : index
    %152 = vector.load %arg14[%c0_54, %c0_55] : memref<1x1xf32, #tpu.memory_space<vmem>>, vector<1x1xf32>
    %cst_56 = arith.constant 0.000000e+00 : f32
    %153 = vector.broadcast %cst_56 : f32 to vector<1x128xf32>
    %154 = arith.select %70, %151, %153 : vector<1x128xi1>, vector<1x128xf32>
    %cst_57 = arith.constant dense<0.000000e+00> : vector<1xf32>
    %155 = vector.multi_reduction <add>, %154, %cst_57 [1] : vector<1x128xf32> to vector<1xf32>
    %156 = vector.shape_cast %155 : vector<1xf32> to vector<1x1xf32>
    %157 = arith.addf %152, %156 : vector<1x1xf32>
    %c0_58 = arith.constant 0 : index
    %c0_59 = arith.constant 0 : index
    %158 = vector.load %arg14[%c0_58, %c0_59] : memref<1x1xf32, #tpu.memory_space<vmem>>, vector<1x1xf32>
    tpu.vector_store %arg14[%c0_58, %c0_59], %157 {strides = array<i32>} : memref<1x1xf32, #tpu.memory_space<vmem>>, vector<1x1xf32>,
    %c0_60 = arith.constant 0 : index
    %c0_61 = arith.constant 0 : index
    %c0_62 = arith.constant 0 : index
    %159 = vector.load %arg9[%c0_60, %c0_61, %c0_62] : memref<1x8x128xf32, #tpu.memory_space<vmem>>, vector<1x8x128xf32>
    %160 = vector.shape_cast %159 : vector<1x8x128xf32> to vector<8x128xf32>
    %cst_63 = arith.constant dense<0xFF800000> : vector<128xf32>
    %161 = vector.multi_reduction <maximumf>, %160, %cst_63 [0] : vector<8x128xf32> to vector<128xf32>
    %162 = vector.shape_cast %161 : vector<128xf32> to vector<1x128xf32>
    %163 = vector.broadcast %162 : vector<1x128xf32> to vector<8x128xf32>
    %164 = arith.subf %160, %163 : vector<8x128xf32>
    %165 = math.exp %164 : vector<8x128xf32>
    %cst_64 = arith.constant dense<0.000000e+00> : vector<128xf32>
    %166 = vector.multi_reduction <add>, %165, %cst_64 [0] : vector<8x128xf32> to vector<128xf32>
    %167 = vector.shape_cast %166 : vector<128xf32> to vector<1x128xf32>
    %168 = tpu.iota {dimensions = array<i32: 0>} : vector<8x1xi32>
    %169 = vector.broadcast %168 : vector<8x1xi32> to vector<8x128xi32>
    %170 = vector.broadcast %68 : vector<1x128xi32> to vector<8x128xi32>
    %171 = arith.cmpi eq, %169, %170 : vector<8x128xi32>
    %cst_65 = arith.constant 0.000000e+00 : f32
    %172 = vector.broadcast %cst_65 : f32 to vector<8x128xf32>
    %173 = arith.select %171, %160, %172 : vector<8x128xi1>, vector<8x128xf32>
    %cst_66 = arith.constant dense<0.000000e+00> : vector<128xf32>
    %174 = vector.multi_reduction <add>, %173, %cst_66 [0] : vector<8x128xf32> to vector<128xf32>
    %175 = vector.shape_cast %174 : vector<128xf32> to vector<1x128xf32>
    %176 = math.log %167 : vector<1x128xf32>
    %177 = arith.addf %176, %162 : vector<1x128xf32>
    %178 = arith.subf %177, %175 : vector<1x128xf32>
    %c128_i32_67 = arith.constant 128 : i32
    %179 = vector.broadcast %c128_i32_67 : i32 to vector<1x128xi32>
    %180 = arith.cmpi slt, %6, %179 : vector<1x128xi32>
    %cst_68 = arith.constant dense<true> : vector<1x128xi1>
    %181 = arith.xori %180, %cst_68 : vector<1x128xi1>
    %182 = arith.ori %70, %181 : vector<1x128xi1>
    %cst_69 = arith.constant 0.000000e+00 : f32
    %183 = vector.broadcast %cst_69 : f32 to vector<1x128xf32>
    %184 = arith.select %182, %183, %178 : vector<1x128xi1>, vector<1x128xf32>
    %c0_70 = arith.constant 0 : index
    %c0_71 = arith.constant 0 : index
    %c0_72 = arith.constant 0 : index
    %185 = vector.load %arg10[%c0_70, %c0_71, %c0_72] : memref<1x1x128xf32, #tpu.memory_space<vmem>>, vector<1x1x128xf32>
    %186 = vector.shape_cast %185 : vector<1x1x128xf32> to vector<1x128xf32>
    %187 = vector.shape_cast %184 : vector<1x128xf32> to vector<1x1x128xf32>
    tpu.vector_store %arg10[%c0_70, %c0_71, %c0_72], %187 {strides = array<i32>} : memref<1x1x128xf32, #tpu.memory_space<vmem>>, vector<1x1x128xf32>,
    %c0_73 = arith.constant 0 : index
    %c0_74 = arith.constant 0 : index
    %188 = vector.load %arg15[%c0_73, %c0_74] : memref<1x1xf32, #tpu.memory_space<vmem>>, vector<1x1xf32>
    %cst_75 = arith.constant 0.000000e+00 : f32
    %189 = vector.broadcast %cst_75 : f32 to vector<1x128xf32>
    %190 = arith.select %70, %178, %189 : vector<1x128xi1>, vector<1x128xf32>
    %cst_76 = arith.constant dense<0.000000e+00> : vector<1xf32>
    %191 = vector.multi_reduction <add>, %190, %cst_76 [1] : vector<1x128xf32> to vector<1xf32>
    %192 = vector.shape_cast %191 : vector<1xf32> to vector<1x1xf32>
    %193 = arith.addf %188, %192 : vector<1x1xf32>
    %c0_77 = arith.constant 0 : index
    %c0_78 = arith.constant 0 : index
    %194 = vector.load %arg15[%c0_77, %c0_78] : memref<1x1xf32, #tpu.memory_space<vmem>>, vector<1x1xf32>
    tpu.vector_store %arg15[%c0_77, %c0_78], %193 {strides = array<i32>} : memref<1x1xf32, #tpu.memory_space<vmem>>, vector<1x1xf32>,
    %c0_79 = arith.constant 0 : index
    %c0_80 = arith.constant 0 : index
    %195 = vector.load %arg16[%c0_79, %c0_80] : memref<1x1xf32, #tpu.memory_space<vmem>>, vector<1x1xf32>
    %196 = arith.extui %70 : vector<1x128xi1> to vector<1x128xi32>
    %197 = arith.sitofp %196 : vector<1x128xi32> to vector<1x128xf32>
    %cst_81 = arith.constant dense<0.000000e+00> : vector<1xf32>
    %198 = vector.multi_reduction <add>, %197, %cst_81 [1] : vector<1x128xf32> to vector<1xf32>
    %199 = vector.shape_cast %198 : vector<1xf32> to vector<1x1xf32>
    %200 = arith.addf %195, %199 : vector<1x1xf32>
    %c0_82 = arith.constant 0 : index
    %c0_83 = arith.constant 0 : index
    %201 = vector.load %arg16[%c0_82, %c0_83] : memref<1x1xf32, #tpu.memory_space<vmem>>, vector<1x1xf32>
    tpu.vector_store %arg16[%c0_82, %c0_83], %200 {strides = array<i32>} : memref<1x1xf32, #tpu.memory_space<vmem>>, vector<1x1xf32>,
    %c0_i32_84 = arith.constant 0 : i32
    %202 = arith.cmpi eq, %arg1, %c0_i32_84 : i32
    %203 = arith.extui %202 : i1 to i32
    %c0_i32_85 = arith.constant 0 : i32
    %204 = arith.cmpi ne, %203, %c0_i32_85 : i32
    scf.if %204 {
      %c0_86 = arith.constant 0 : index
      %c0_87 = arith.constant 0 : index
      %205 = vector.load %arg14[%c0_86, %c0_87] : memref<1x1xf32, #tpu.memory_space<vmem>>, vector<1x1xf32>
      %c0_88 = arith.constant 0 : index
      %c0_89 = arith.constant 0 : index
      %c0_90 = arith.constant 0 : index
      %206 = vector.load %arg11[%c0_88, %c0_89, %c0_90] : memref<1x1x1xf32, #tpu.memory_space<vmem>>, vector<1x1x1xf32>
      %207 = vector.shape_cast %206 : vector<1x1x1xf32> to vector<1x1xf32>
      %208 = vector.shape_cast %205 : vector<1x1xf32> to vector<1x1x1xf32>
      tpu.vector_store %arg11[%c0_88, %c0_89, %c0_90], %208 {strides = array<i32>} : memref<1x1x1xf32, #tpu.memory_space<vmem>>, vector<1x1x1xf32>,
      %c0_91 = arith.constant 0 : index
      %c0_92 = arith.constant 0 : index
      %209 = vector.load %arg15[%c0_91, %c0_92] : memref<1x1xf32, #tpu.memory_space<vmem>>, vector<1x1xf32>
      %c0_93 = arith.constant 0 : index
      %c0_94 = arith.constant 0 : index
      %c0_95 = arith.constant 0 : index
      %210 = vector.load %arg12[%c0_93, %c0_94, %c0_95] : memref<1x1x1xf32, #tpu.memory_space<vmem>>, vector<1x1x1xf32>
      %211 = vector.shape_cast %210 : vector<1x1x1xf32> to vector<1x1xf32>
      %212 = vector.shape_cast %209 : vector<1x1xf32> to vector<1x1x1xf32>
      tpu.vector_store %arg12[%c0_93, %c0_94, %c0_95], %212 {strides = array<i32>} : memref<1x1x1xf32, #tpu.memory_space<vmem>>, vector<1x1x1xf32>,
      %c0_96 = arith.constant 0 : index
      %c0_97 = arith.constant 0 : index
      %213 = vector.load %arg16[%c0_96, %c0_97] : memref<1x1xf32, #tpu.memory_space<vmem>>, vector<1x1xf32>
      %c0_98 = arith.constant 0 : index
      %c0_99 = arith.constant 0 : index
      %c0_100 = arith.constant 0 : index
      %214 = vector.load %arg13[%c0_98, %c0_99, %c0_100] : memref<1x1x1xf32, #tpu.memory_space<vmem>>, vector<1x1x1xf32>
      %215 = vector.shape_cast %214 : vector<1x1x1xf32> to vector<1x1xf32>
      %216 = vector.shape_cast %213 : vector<1x1xf32> to vector<1x1x1xf32>
      tpu.vector_store %arg13[%c0_98, %c0_99, %c0_100], %216 {strides = array<i32>} : memref<1x1x1xf32, #tpu.memory_space<vmem>>, vector<1x1x1xf32>,
    } else {
    }
    return
  }
  func.func @transform_0(%arg0: i32, %arg1: i32) -> (i32, i32, i32) {
    %c0_i32 = arith.constant 0 : i32
    %c0_i32_0 = arith.constant 0 : i32
    %c0_i32_1 = arith.constant 0 : i32
    return %arg0, %c0_i32, %c0_i32_0 : i32, i32, i32
  }
  func.func @transform_1(%arg0: i32, %arg1: i32) -> (i32, i32, i32) {
    %c0_i32 = arith.constant 0 : i32
    %c0_i32_0 = arith.constant 0 : i32
    %c0_i32_1 = arith.constant 0 : i32
    return %arg0, %c0_i32, %c0_i32_0 : i32, i32, i32
  }
  func.func @transform_2(%arg0: i32, %arg1: i32) -> (i32, i32, i32) {
    %c0_i32 = arith.constant 0 : i32
    %c0_i32_0 = arith.constant 0 : i32
    %c0_i32_1 = arith.constant 0 : i32
    return %arg0, %c0_i32, %c0_i32_0 : i32, i32, i32
  }
  func.func @transform_3(%arg0: i32, %arg1: i32) -> (i32, i32, i32) {
    %c0_i32 = arith.constant 0 : i32
    %c0_i32_0 = arith.constant 0 : i32
    return %arg0, %c0_i32, %arg1 : i32, i32, i32
  }
  func.func @transform_4(%arg0: i32, %arg1: i32) -> (i32, i32, i32) {
    %c0_i32 = arith.constant 0 : i32
    %c0_i32_0 = arith.constant 0 : i32
    return %arg0, %c0_i32, %arg1 : i32, i32, i32
  }
  func.func @transform_5(%arg0: i32, %arg1: i32) -> (i32, i32) {
    %c0_i32 = arith.constant 0 : i32
    %c0_i32_0 = arith.constant 0 : i32
    return %c0_i32, %arg1 : i32, i32
  }
  func.func @transform_6(%arg0: i32, %arg1: i32) -> (i32, i32, i32) {
    %c0_i32 = arith.constant 0 : i32
    %c0_i32_0 = arith.constant 0 : i32
    return %arg0, %c0_i32, %arg1 : i32, i32, i32
  }
  func.func @transform_7(%arg0: i32, %arg1: i32) -> (i32, i32, i32) {
    %c0_i32 = arith.constant 0 : i32
    %c0_i32_0 = arith.constant 0 : i32
    return %arg0, %c0_i32, %arg1 : i32, i32, i32
  }
  func.func @transform_8(%arg0: i32, %arg1: i32) -> (i32, i32, i32) {
    %c0_i32 = arith.constant 0 : i32
    %c0_i32_0 = arith.constant 0 : i32
    return %arg0, %c0_i32, %arg1 : i32, i32, i32
  }
  func.func @transform_9(%arg0: i32, %arg1: i32) -> (i32, i32, i32) {
    %c0_i32 = arith.constant 0 : i32
    %c0_i32_0 = arith.constant 0 : i32
    %c0_i32_1 = arith.constant 0 : i32
    return %arg0, %c0_i32, %c0_i32_0 : i32, i32, i32
  }
  func.func @transform_10(%arg0: i32, %arg1: i32) -> (i32, i32, i32) {
    %c0_i32 = arith.constant 0 : i32
    %c0_i32_0 = arith.constant 0 : i32
    %c0_i32_1 = arith.constant 0 : i32
    return %arg0, %c0_i32, %c0_i32_0 : i32, i32, i32
  }
  func.func @transform_11(%arg0: i32, %arg1: i32) -> (i32, i32, i32) {
    %c0_i32 = arith.constant 0 : i32
    %c0_i32_0 = arith.constant 0 : i32
    %c0_i32_1 = arith.constant 0 : i32
    return %arg0, %c0_i32, %c0_i32_0 : i32, i32, i32
  }
}

</mosaic_0001>

<bundles_post_ra>
// kernel: custom-call
= control target key start
LH: loop header
LB: loop body
LE: loop exit
PB: predicated region body
PF: predicated region fallthrough
CT: control target
= control target key end

     0   :  { %s6_s0 = inlined_call_operand.vmem [shape: s32[2,1], index: 0, kind: output, shape index: {}]  }

// kernel: _forward_impl.2
= control target key start
LH: loop header
LB: loop body
LE: loop exit
PB: predicated region body
PF: predicated region fallthrough
CT: control target
= control target key end

     0   :  { %s640_s15 = smov 0   ;;  %s642_s16 = smov 0   ;;  %s705_s0 = inlined_call_operand.vmem [shape: f32[2,8,4], index: 0, kind: input, shape index: {}]   ;;  %s706_s1 = inlined_call_operand.vmem [shape: f32[4,128], index: 1, kind: input, shape index: {}]   ;;  %s707_s2 = inlined_call_operand.vmem [shape: f32[2,1,128], index: 2, kind: output, shape index: {0}]   ;;  %s708_s3 = inlined_call_operand.vmem [shape: s32[2,1,128], index: 3, kind: output, shape index: {1}]   ;;  %s709_s4 = inlined_call_operand.vmem [shape: s32[2,8,1], index: 4, kind: output, shape index: {2}]  }
   0x1   :  { %s644_s17 = smov 0  }
   0x2 LB: > { %s27_s18 = sadd.s32 1, %s602_s16  ;;  %p540_p0 = scmp.ge.s32.totalorder %s606_s17, 1  ;;  %s606_s17 = sphi %s644_s17, %s15_s17   ;;  %s602_s16 = sphi %s642_s16, %s711_s16   ;;  %s598_s15 = sphi %s640_s15, %s710_s15  }
   0x3   : > { %p29_p1 = scmp.ge.s32.totalorder %s27_s18, 2  ;;  %p191_p2 = scmp.lt.s32.totalorder %s606_s17, 3 }
   0x5   : > { %s713_s18 = smov (%p29_p1, %s27_s18), 0  ;;  %p192_p3 = pnand %p540_p0, %p191_p2 }
   0x6   : > { %p231_p4 = scmp.lt.s32.totalorder (!%p192_p3), %s598_s15, 1  ;;  %vm376_vm0 = vcmask (!%p192_p3), 7168   ;;  %v608_v0 = vmov (!%p192_p3), 2   ;;  %v609_v1 = vmov (!%p192_p3), -1.0   ;;  %v610_v2 = vmov (!%p192_p3), 3   ;;  %s611_s26 = smov (!%p192_p3), 2  }
   0x7   : > { %195 = sbr.rel (%p192_p3) target bundleno = 839 (0x347), region = 28  ;;  %576 = vset.pattern.permute.xlu1 (!%p192_p3), %v608_v0  ;;  %377 = vst.msk [vmem:[#allocation2] sm:$0xff] (!%p192_p3), %vm376_vm0, %v609_v1  ;;  %578 = vset.pattern.permute.xlu0 (!%p192_p3), %v610_v2  ;;  %v612_v4 = vmov (!%p192_p3), 0   ;;  %v613_v5 = vmov (!%p192_p3), 1   ;;  %s614_s27 = smov (!%p192_p3), 127   ;;  %v265_v10 = vlaneseq (!%p192_p3) }
   0x8   : > { %v258_v14 = vld [vmem:[%s706_s1 + $0x2] sm:$0x1] (!%p192_p3)  ;;  %v256_v16 = vld [vmem:[%s706_s1] sm:$0x1] (!%p192_p3)  ;;  %v257_v17 = vld [vmem:[%s706_s1 + $0x1] sm:$0x1] (!%p192_p3) }
   0x9   : > { %v266_v12 = vshrl.u32 (!%p192_p3), %v265_v10, 7  ;;  %v259_v18 = vld [vmem:[%s706_s1 + $0x3] sm:$0x1] (!%p192_p3)  ;;  %v311_v25 = vsub.f32 (!%p192_p3), %v258_v14, %v256_v16  ;;  %v331_v58 = vand.u32 (!%p192_p3), 127, %v265_v10 }
   0xa   : > { %v312_v26 = vsub.f32 (!%p192_p3), %v259_v18, %v257_v17 }
   0xb   : > { %v267_v15 = vsub.s32 (!%p192_p3), 0, %v266_v12 }
   0xc   : > { %v313_v33 = vmul.f32 (!%p192_p3), %v312_v26, %v311_v25 }
   0xd   : > { %v268_v19 = vrot.slane (!%p192_p3), %v258_v14, %v267_v15  ;;  %v277_v20 = vrot.slane (!%p192_p3), %v256_v16, %v267_v15  ;;  %v297_v21 = vrot.slane (!%p192_p3), %v257_v17, %v267_v15  ;;  %v288_v22 = vrot.slane (!%p192_p3), %v259_v18, %v267_v15 }
   0xe   : > { %s715_s15 = smov (!%p231_p4, %s598_s15), 1  ;;  %v322_v36 = vrot.slane %v313_v33, %v267_v15  ;;  %v379_v57 = vld [vmem:[#allocation2] sm:$0xff] }
   0xf   : > { %s541_s19 = sshll.u32 %s715_s15, 3  ;;  %s244_s12 = scalar_lea.vmem %s707_s2, %s715_s15 }
  0x10   : > { %s234_s22 = scalar_lea.vmem %s705_s0, %s541_s19  ;;  %s668_s25 = scalar_lea.vmem %s709_s4, %s541_s19 }
  0x11   : > { %v255_v3 = vld [vmem:[%s234_s22] sm:$0xff]  ;;  %378 = vst.msk [vmem:[%s668_s25] sm:$0xff] %vm376_vm0, %v612_v4  ;;  %s250_s19 = scalar_lea.vmem %s708_s3, %s715_s15 }
  0x12   : > { %302 = vrot.lane.b32.xlu0 %v255_v3, %s611_s26  ;;  %262 = vperm.xlu1 %576, %v255_v3  }
  0x16   : > { %577 = vset.pattern.permute.xlu1 %v612_v4 }
  0x17   : > { %271 = vperm.xlu1 %577, %v255_v3  }
  0x1b   : > { %579 = vset.pattern.permute.xlu1 %v613_v5 }
  0x1c   : > { %291 = vperm.xlu1 %579, %v255_v3  }
  0x20   : > { %580 = vset.pattern.permute.xlu1 %v608_v0 }
  0x84   : > { %v303_v6 = vpop.permute.xlu0 %302 }
  0x85   : > { %v305_v7 = vsub.f32 %v255_v3, %v303_v6 }
  0x87   : > { %307 = vrot.lane.b32.xlu0 %v305_v7, %s614_s27 }
  0x8b   : > { %282 = vperm.xlu0 %578, %v255_v3  }
  0x8f   : > { %581 = vset.pattern.permute.xlu0 %v608_v0 }
  0x91   : > { %v263_v11 = vpop.permute.xlu1 %262 }
  0x92   : > { %v269_v27 = vmin.f32 %v263_v11, %v268_v19 }
  0x96   : > { %v272_v13 = vpop.permute.xlu1 %271 }
  0x97   : > { %v278_v28 = vmax.f32 %v272_v13, %v277_v20 }
  0x99   : > { %v279_v31 = vsub.f32 %v269_v27, %v278_v28 }
  0x9b   : > { %v292_v23 = vpop.permute.xlu1 %291  ;;  %v280_v34 = vmax.f32 %v279_v31, 0.0 }
  0x9c   : > { %v298_v29 = vmax.f32 %v292_v23, %v297_v21 }
  0xf9   : > { %v308_v8 = vpop.permute.xlu0 %307 }
  0xfa   : > { %v310_v9 = vmul.f32 %v308_v8, %v305_v7  ;;  %v381_v8 = vld [vmem:[%s668_s25] sm:$0xff] }
  0xfc   : > { %316 = vperm.xlu1 %580, %v310_v9  }
 0x10a   : > { %v283_v24 = vpop.permute.xlu0 %282 }
 0x10b   : > { %v289_v30 = vmin.f32 %v283_v24, %v288_v22 }
 0x10d   : > { %v299_v32 = vsub.f32 %v289_v30, %v298_v29 }
 0x10f   : > { %v300_v35 = vmax.f32 %v299_v32, 0.0 }
 0x111   : > { %v301_v38 = vmul.f32 %v300_v35, %v280_v34 }
 0x17b   : > { %v317_v37 = vpop.permute.xlu1 %316 }
 0x17c   : > { %v323_v39 = vadd.f32 %v322_v36, %v317_v37 }
 0x17e   : > { %v324_v40 = vsub.f32 %v323_v39, %v301_v38 }
 0x180   : > { %v325_v41 = vmax.f32 %v324_v40, 1e-12 }
 0x182   : > { %582 = vrcp.f32 %v325_v41 }
 0x18c   : > { %v583_v42 = vpop.eup %582 }
 0x18d   : > { %v327_v43 = vmul.f32 %v583_v42, %v301_v38 }
 0x18f   : > { %v332_v44 = vrot.slane %v327_v43, 4  ;;  %351 = vmax.xlane.f32.xlu0 %v327_v43 }
 0x191   : > { %v333_v45 = vmax.f32 %v327_v43, %v332_v44 }
 0x193   : > { %v334_v46 = vrot.slane %v333_v45, 2 }
 0x195   : > { %v335_v47 = vmax.f32 %v333_v45, %v334_v46 }
 0x197   : > { %v336_v48 = vrot.slane %v335_v47, 1 }
 0x199   : > { %v337_v49 = vmax.f32 %v335_v47, %v336_v48 }
 0x19b   : > { %vm338_vm1 = vcmp.eq.f32.partialorder %v327_v43, %v337_v49  ;;  %349 = vst [vmem:[%s244_s12] sm:$0x1] %v337_v49 }
 0x19c   : > { %v339_v50 = vsel %vm338_vm1, %v266_v12, 8 }
 0x19d   : > { %v340_v51 = vrot.slane %v339_v50, 4 }
 0x19f   : > { %vm341_vm2 = vcmp.lt.s32.totalorder %v339_v50, %v340_v51 }
 0x1a0   : > { %v342_v52 = vsel %vm341_vm2, %v339_v50, %v340_v51 }
 0x1a1   : > { %v343_v53 = vrot.slane %v342_v52, 2 }
 0x1a3   : > { %vm344_vm3 = vcmp.lt.s32.totalorder %v342_v52, %v343_v53 }
 0x1a4   : > { %v345_v54 = vsel %vm344_vm3, %v342_v52, %v343_v53 }
 0x1a5   : > { %v346_v55 = vrot.slane %v345_v54, 1 }
 0x1a7   : > { %vm347_vm4 = vcmp.lt.s32.totalorder %v345_v54, %v346_v55 }
 0x1a8   : > { %v348_v56 = vsel %vm347_vm4, %v345_v54, %v346_v55 }
 0x1a9   : > { %350 = vst [vmem:[%s250_s19] sm:$0x1] %v348_v56 }
 0x21c   : > { %v352_v59 = vpop.xlane.xlu0 %351 }
 0x21d   : > { %vm353_vm5 = vcmp.eq.f32.partialorder %v327_v43, %v352_v59  ;;  %v386_v60 = vmax.f32 %v352_v59, %v379_v57  ;;  %vm380_vm7 = vcmp.gt.f32.partialorder %v352_v59, %v379_v57 }
 0x21e   : > { %v354_v61 = vsel %vm353_vm5, %v331_v58, 128 }
 0x21f   : > { %387 = vst.msk [vmem:[#allocation2] sm:$0xff] %vm376_vm0, %v386_v60  ;;  %v356_v62 = vshra.s32 %v354_v61, 16  ;;  %v355_v0 = vand.u32 65535, %v354_v61 }
 0x221   : > { %v358_v63 = vcvt.s32.f32 %v356_v62  ;;  %v357_v2 = vcvt.s32.f32 %v355_v0 }
 0x223   : > { %359 = vmin.xlane.f32.xlu1 %v358_v63 }
 0x2b0   : > { %v360_v1 = vpop.xlane.xlu1 %359 }
 0x2b1   : > { %vm361_vm6 = vcmp.eq.f32.partialorder %v358_v63, %v360_v1  ;;  %v366_v4 = vcvt.f32.s32 %v360_v1 }
 0x2b2   : > { %v362_v3 = vsel %vm361_vm6, %v357_v2, inf }
 0x2b3   : > { %363 = vmin.xlane.f32.xlu0 %v362_v3  ;;  %v367_v6 = vshll.u32 %v366_v4, 16 }
 0x340   : > { %v364_v5 = vpop.xlane.xlu0 %363 }
 0x341   : > { %v365_v7 = vcvt.f32.s32 %v364_v5 }
 0x343   : > { %v368_v9 = vadd.s32 %v367_v6, %v365_v7 }
 0x345   : > { %v382_v10 = vsel %vm380_vm7, %v368_v9, %v381_v8 }
 0x346   : > { %384 = vst.msk [vmem:[%s668_s25] sm:$0xff] %vm376_vm0, %v382_v10 }
 0x347 PF: > { %s15_s17 = sadd.s32 1, %s606_s17   ;;  %s710_s15 = smov %s602_s16 }
 0x348   : > { %p12_p5 = scmp.ge.s32.totalorder %s15_s17, 4   ;;  %s711_s16 = smov %s713_s18 }
 0x34a   :  { %14 = sbr.rel (!%p12_p5) target bundleno = 2 (0x2), region = 89 }

// kernel: _forward_impl.3
= control target key start
LH: loop header
LB: loop body
LE: loop exit
PB: predicated region body
PF: predicated region fallthrough
CT: control target
= control target key end

     0   :  { %s1229_s17 = smov 0   ;;  %s1231_s18 = smov 0   ;;  %s1368_s0 = inlined_call_operand.vmem [shape: f32[2,8,4], index: 0, kind: input, shape index: {}]   ;;  %s1369_s1 = inlined_call_operand.vmem [shape: s32[2,8,1], index: 1, kind: input, shape index: {}]   ;;  %s1370_s2 = inlined_call_operand.vmem [shape: s32[2,8,1], index: 2, kind: input, shape index: {}]   ;;  %s1371_s3 = inlined_call_operand.vmem [shape: f32[2,1,128], index: 3, kind: input, shape index: {}]   ;;  %s1372_s4 = inlined_call_operand.vmem [shape: s32[2,1,128], index: 4, kind: input, shape index: {}]   ;;  %s1373_s5 = inlined_call_operand.vmem [shape: f32[4,128], index: 5, kind: input, shape index: {}]   ;;  %s1374_s6 = inlined_call_operand.vmem [shape: f32[2,4,128], index: 6, kind: input, shape index: {}]   ;;  %s1375_s7 = inlined_call_operand.vmem [shape: f32[2,8,128], index: 7, kind: input, shape index: {}]   ;;  %s1376_s8 = inlined_call_operand.vmem [shape: f32[2,1,128], index: 8, kind: output, shape index: {0}]   ;;  %s1377_s9 = inlined_call_operand.vmem [shape: f32[2,1,1], index: 9, kind: output, shape index: {1}]   ;;  %s1378_s10 = inlined_call_operand.vmem [shape: f32[2,1,1], index: 10, kind: output, shape index: {2}]   ;;  %s1379_s11 = inlined_call_operand.vmem [shape: f32[2,1,1], index: 11, kind: output, shape index: {3}]  }
   0x1   :  { %s1233_s19 = smov 0  }
   0x2 LB: > { %s34_s20 = sadd.s32 1, %s1158_s18  ;;  %p1075_p0 = scmp.ge.s32.totalorder %s1162_s19, 1  ;;  %s1162_s19 = sphi %s1233_s19, %s22_s19   ;;  %s1158_s18 = sphi %s1231_s18, %s1383_s18   ;;  %s1154_s17 = sphi %s1229_s17, %s1382_s17  }
   0x3   : > { %p36_p1 = scmp.ge.s32.totalorder %s34_s20, 2  ;;  %p438_p2 = scmp.lt.s32.totalorder %s1162_s19, 3 }
   0x5   : > { %s1385_s20 = smov (%p36_p1, %s34_s20), 0  ;;  %p439_p3 = pnand %p1075_p0, %p438_p2 }
   0x6   : > { %p525_p4 = scmp.lt.s32.totalorder (!%p439_p3), %s1154_s17, 1  ;;  %v1164_v0 = vmov (!%p439_p3), 0   ;;  %v1165_v1 = vmov (!%p439_p3), 2   ;;  %v1166_v4 = vmov (!%p439_p3), 1   ;;  %v1167_v6 = vmov (!%p439_p3), 3  }
   0x7   : > { %442 = sbr.rel (%p439_p3) target bundleno = 371 (0x173), region = 52  ;;  %1118 = vset.pattern.permute.xlu0 (!%p439_p3), %v1164_v0  ;;  %1119 = vset.pattern.permute.xlu1 (!%p439_p3), %v1165_v1  ;;  %vm586_vm0 = vcmask (!%p439_p3), 0   ;;  %v1168_v7 = vmov (!%p439_p3), 0.0   ;;  %v590_v17 = vlaneseq (!%p439_p3)  ;;  %v687_v41 = vld [vmem:[%s1373_s5 + $0x2] sm:$0x1] (!%p439_p3)  ;;  %vm768_vm10 = vcmask (!%p439_p3), 1040384  }
   0x8   : > { %588 = vst.msk [vmem:[#allocation3] sm:$0x1] (!%p439_p3), %vm586_vm0, %v1168_v7  ;;  %587 = vst.msk [vmem:[#allocation2] sm:$0x1] (!%p439_p3), %vm586_vm0, %v1168_v7  ;;  %v688_v49 = vld [vmem:[%s1373_s5 + $0x3] sm:$0x1] (!%p439_p3) }
   0x9   : > { %589 = vst.msk [vmem:[#allocation4] sm:$0x1] (!%p439_p3), %vm586_vm0, %v1168_v7  ;;  %v591_v18 = vand.u32 (!%p439_p3), 127, %v590_v17  ;;  %v1276_v19 = vshrl.u32 (!%p439_p3), %v590_v17, 7  ;;  %v698_v56 = vmul.f32 (!%p439_p3), 0.1, %v688_v49 }
   0xb   : > { %v619_v33 = vsub.s32 (!%p439_p3), 0, %v1276_v19 }
   0xe   : > { %s1387_s17 = smov (!%p525_p4, %s1154_s17), 1 }
   0xf   : > { %s1076_s21 = sshll.u32 %s1387_s17, 3  ;;  %s542_s28 = scalar_lea.vmem %s1371_s3, %s1387_s17 }
  0x10   : > { %s536_s24 = scalar_lea.vmem %s1370_s2, %s1076_s21  ;;  %s528_s27 = scalar_lea.vmem %s1368_s0, %s1076_s21 }
  0x11   : > { %v597_v2 = vld [vmem:[%s536_s24] sm:$0xff]  ;;  %s532_s30 = scalar_lea.vmem %s1369_s1, %s1076_s21  ;;  %s566_s14 = scalar_lea.vmem %s1375_s7, %s1076_s21 }
  0x12   : > { %599 = vperm.xlu0 %1118, %v597_v2   ;;  %v624_v3 = vld [vmem:[%s528_s27] sm:$0xff]  ;;  %s548_s21 = scalar_lea.vmem %s1372_s4, %s1387_s17  ;;  %s1079_s12 = sshll.u32 %s1387_s17, 2 }
  0x13   : > { %649 = vperm.xlu1 %1119, %v624_v3   ;;  %v670_v5 = vld [vmem:[%s532_s30] sm:$0xff]  ;;  %s572_s24 = scalar_lea.vmem %s1376_s8, %s1387_s17  ;;  %s578_s27 = scalar_lea.vmem %s1378_s10, %s1387_s17 }
  0x14   : > { %v1268_v8 = vld [vmem:[%s566_s14] sm:$0xff]  ;;  %s581_s30 = scalar_lea.vmem %s1379_s11, %s1387_s17  ;;  %s575_s14 = scalar_lea.vmem %s1377_s9, %s1387_s17 }
  0x15   : > { %v776_v9 = vrot.slane %v1268_v8, 4  ;;  %v613_v32 = vld [vmem:[%s548_s21] sm:$0x1]  ;;  %s559_s21 = scalar_lea.vmem %s1374_s6, %s1079_s12 }
  0x16   : > { %627 = vperm.xlu0 %1118, %v624_v3  }
  0x17   : > { %1120 = vset.pattern.permute.xlu1 %v1166_v4  ;;  %v777_v10 = vmax.f32 %v1268_v8, %v776_v9  ;;  %v615_v4 = vld [vmem:[%s542_s28] sm:$0x1] }
  0x18   : > { %638 = vperm.xlu1 %1120, %v624_v3  }
  0x19   : > { %v778_v11 = vrot.slane %v777_v10, 2 }
  0x1a   : > { %1121 = vset.pattern.permute.xlu0 %v1167_v6 }
  0x1b   : > { %660 = vperm.xlu0 %1121, %v624_v3   ;;  %v779_v12 = vmax.f32 %v777_v10, %v778_v11 }
  0x1c   : > { %1122 = vset.pattern.permute.xlu1 %v1164_v0 }
  0x1d   : > { %672 = vperm.xlu1 %1122, %v670_v5   ;;  %v780_v13 = vrot.slane %v779_v12, 1 }
  0x1f   : > { %1123 = vset.pattern.permute.xlu0 %v1164_v0  ;;  %v1272_v14 = vmax.f32 %v779_v12, %v780_v13  ;;  %v692_v12 = vmul.f32 0.1, %v687_v41 }
  0x21   : > { %v782_v15 = vsub.f32 %v1268_v8, %v1272_v14 }
  0x23   : > { %v783_v16 = vmul.f32 1.442695, %v782_v15 }
  0x25   : > { %1124 = vpow2.f32 %v783_v16 }
  0x26   : > { %1126 = vrcp.f32 %v687_v41 }
  0x27   : > { %1128 = vrcp.f32 %v688_v49 }
  0x28   : > { %1130 = vrcp.f32 %v698_v56 }
  0x2f   : > { %v1125_v22 = vpop.eup %1124 }
  0x30   : > { %v785_v26 = vrot.slane %v1125_v22, 4 }
  0x32   : > { %v786_v29 = vadd.f32 %v1125_v22, %v785_v26 }
  0x34   : > { %v787_v35 = vrot.slane %v786_v29, 2 }
  0x36   : > { %v788_v40 = vadd.f32 %v787_v35, %v786_v29 }
  0x38   : > { %v789_v51 = vrot.slane %v788_v40, 1 }
  0x3a   : > { %v790_v63 = vadd.f32 %v789_v51, %v788_v40 }
  0x3c   : > { %1132 = vlog2.f32 %v790_v63 }
  0x3d   : > { %1134 = vrcp.f32 %v692_v12 }
  0x91   : > { %v600_v20 = vpop.permute.xlu0 %599 }
  0x92   : > { %vm601_vm1 = vcmp.eq.s32.totalorder %v591_v18, %v600_v20  ;;  %v650_v24 = vpop.permute.xlu1 %649 }
  0x93   : > { %v602_v21 = vsel %vm601_vm1, %v1276_v19, 4294967295 }
  0x94   : > { %v603_v23 = vrot.slane %v602_v21, 4 }
  0x95   : > { %v628_v36 = vpop.permute.xlu0 %627 }
  0x96   : > { %vm604_vm2 = vcmp.gt.s32.totalorder %v602_v21, %v603_v23 }
  0x97   : > { %v605_v25 = vsel %vm604_vm2, %v602_v21, %v603_v23  ;;  %v639_v31 = vpop.permute.xlu1 %638  ;;  %v1127_v21 = vpop.eup %1126 }
  0x98   : > { %v606_v27 = vrot.slane %v605_v25, 2 }
  0x9a   : > { %vm607_vm3 = vcmp.gt.s32.totalorder %v605_v25, %v606_v27  ;;  %v661_v42 = vpop.permute.xlu0 %660 }
  0x9b   : > { %v608_v28 = vsel %vm607_vm3, %v605_v25, %v606_v27  ;;  %v1129_v27 = vpop.eup %1128 }
  0x9c   : > { %v609_v30 = vrot.slane %v608_v28, 1  ;;  %v673_v39 = vpop.permute.xlu1 %672 }
  0x9e   : > { %vm610_vm4 = vcmp.gt.s32.totalorder %v608_v28, %v609_v30 }
  0x9f   : > { %v611_v34 = vsel %vm610_vm4, %v608_v28, %v609_v30 }
  0xa0   : > { %vm612_vm5 = vcmp.ge.s32.totalorder %v611_v34, 0 }
  0xa1   : > { %v614_v37 = vsel %vm612_vm5, %v611_v34, %v613_v32  ;;  %v616_v15 = vsel %vm612_vm5, 2.0, %v615_v4 }
  0xa2   : > { %v620_v38 = vrot.slane %v614_v37, %v619_v33  ;;  %vm681_vm7 = vcmp.lt.f32.partialorder %v616_v15, 0.5  ;;  %v686_v37 = vld [vmem:[%s1373_s5 + $0x1] sm:$0x1] }
  0xa4   : > { %vm621_vm6 = vcmp.eq.s32.totalorder %v620_v38, %v1276_v19  ;;  %v1131_v38 = vpop.eup %1130 }
  0xa5   : > { %v1081_v43 = vsel %vm621_vm6, 1.0, %v1168_v7  ;;  %v674_v44 = vsel %vm621_vm6, %v673_v39, 0 }
  0xa6   : > { %v630_v45 = vmul.f32 %v1081_v43, %v628_v36  ;;  %v652_v46 = vmul.f32 %v1081_v43, %v650_v24  ;;  %v641_v47 = vmul.f32 %v1081_v43, %v639_v31  ;;  %v675_v48 = vrot.slane %v674_v44, 4 }
  0xa7   : > { %v663_v50 = vmul.f32 %v1081_v43, %v661_v42  ;;  %v1133_v43 = vpop.eup %1132 }
  0xa8   : > { %v631_v52 = vrot.slane %v630_v45, 4  ;;  %v653_v53 = vrot.slane %v652_v46, 4  ;;  %v642_v54 = vrot.slane %v641_v47, 4  ;;  %v676_v55 = vadd.s32 %v675_v48, %v674_v44 }
  0xa9   : > { %v664_v57 = vrot.slane %v663_v50, 4  ;;  %v804_v51 = vmul.f32 0.6931472, %v1133_v43 }
  0xaa   : > { %v632_v58 = vadd.f32 %v631_v52, %v630_v45  ;;  %v654_v59 = vadd.f32 %v653_v53, %v652_v46  ;;  %v643_v60 = vadd.f32 %v642_v54, %v641_v47  ;;  %v677_v61 = vrot.slane %v676_v55, 2  ;;  %v1135_v52 = vpop.eup %1134  ;;  %v716_v53 = vld [vmem:[%s559_s21] sm:$0xf] }
  0xab   : > { %v665_v62 = vadd.f32 %v664_v57, %v663_v50 }
  0xac   : > { %v633_v0 = vrot.slane %v632_v58, 2  ;;  %v655_v1 = vrot.slane %v654_v59, 2  ;;  %v644_v2 = vrot.slane %v643_v60, 2  ;;  %v678_v3 = vadd.s32 %v677_v61, %v676_v55 }
  0xad   : > { %v666_v5 = vrot.slane %v665_v62, 2 }
  0xae   : > { %v634_v6 = vadd.f32 %v633_v0, %v632_v58  ;;  %v656_v9 = vadd.f32 %v655_v1, %v654_v59  ;;  %v645_v10 = vadd.f32 %v644_v2, %v643_v60  ;;  %v679_v11 = vrot.slane %v678_v3, 1 }
  0xaf   : > { %v667_v13 = vadd.f32 %v666_v5, %v665_v62  ;;  %v805_v58 = vadd.f32 %v804_v51, %v1272_v14 }
  0xb0   : > { %v635_v16 = vrot.slane %v634_v6, 1  ;;  %v657_v17 = vrot.slane %v656_v9, 1  ;;  %v646_v18 = vrot.slane %v645_v10, 1  ;;  %v680_v20 = vadd.s32 %v679_v11, %v678_v3 }
  0xb1   : > { %v668_v22 = vrot.slane %v667_v13, 1 }
  0xb2   : > { %v636_v23 = vadd.f32 %v635_v16, %v634_v6  ;;  %v658_v24 = vadd.f32 %v657_v17, %v656_v9  ;;  %v647_v25 = vadd.f32 %v646_v18, %v645_v10  ;;  %v682_v26 = vadd.s32 1, %v680_v20 }
  0xb3   : > { %v669_v28 = vadd.f32 %v668_v22, %v667_v13 }
  0xb4   : > { %v701_v29 = vsub.f32 %v658_v24, %v636_v23  ;;  %v1300_v30 = vsel %vm681_vm7, 0, %v682_v26  ;;  %v689_v31 = vadd.f32 %v658_v24, %v636_v23 }
  0xb5   : > { %v695_v32 = vadd.f32 %v669_v28, %v647_v25  ;;  %v709_v34 = vsub.f32 %v669_v28, %v647_v25  ;;  %v794_v35 = vrot.slane %v1300_v30, %v619_v33  ;;  %v685_v33 = vld [vmem:[%s1373_s5] sm:$0x1]  ;;  %vm684_vm9 = vcmp.gt.s32.totalorder %v1300_v30, 0 }
  0xb6   : > { %v703_v36 = vmul.f32 %v1127_v21, %v701_v29  ;;  %v690_v44 = vmul.f32 0.5, %v689_v31  ;;  %v1086_v15 = vsel %vm684_vm9, 1.0, %v1168_v7 }
  0xb7   : > { %v696_v39 = vmul.f32 0.5, %v695_v32  ;;  %v711_v40 = vmul.f32 %v1129_v27, %v709_v34  ;;  %vm795_vm8 = vcmp.eq.s32.totalorder %v1276_v19, %v794_v35  ;;  %v822_v22 = vsel %vm768_vm10, %v1086_v15, 0.0 }
  0xb8   : > { %v704_v41 = vmax.f32 %v703_v36, 1e-12  ;;  %v796_v42 = vsel %vm795_vm8, %v1268_v8, 0.0  ;;  %v691_v49 = vsub.f32 %v690_v44, %v685_v33 }
  0xb9   : > { %v697_v45 = vsub.f32 %v696_v39, %v686_v37  ;;  %v712_v46 = vmax.f32 %v711_v40, 1e-12  ;;  %v797_v47 = vrot.slane %v796_v42, 4 }
  0xba   : > { %1136 = vlog2.f32 %v704_v41  ;;  %v694_v56 = vmul.f32 %v1135_v52, %v691_v49 }
  0xbb   : > { %v700_v48 = vmul.f32 %v1131_v38, %v697_v45  ;;  %1138 = vlog2.f32 %v712_v46  ;;  %v798_v19 = vadd.f32 %v797_v47, %v796_v42  ;;  %v812_v46 = vld [vmem:[#allocation3] sm:$0x1] }
  0xbc   : > { %v717_v1 = vsub.f32 %v716_v53, %v694_v56 }
  0xbd   : > { %v725_v50 = vrot.slane %v700_v48, 7  ;;  %v799_v8 = vrot.slane %v798_v19, 2  ;;  %v819_v48 = vld [vmem:[#allocation4] sm:$0x1] }
  0xbe   : > { %v718_v16 = vand.u32 2147483647, %v717_v1  ;;  %v720_v17 = vmul.f32 0.5, %v717_v1 }
  0xbf   : > { %v727_v54 = vsub.f32 %v716_v53, %v725_v50  ;;  %v800_v55 = vadd.f32 %v799_v8, %v798_v19  ;;  %v766_v8 = vld [vmem:[#allocation2] sm:$0x1] }
  0xc0   : > { %v721_v24 = vmul.f32 %v720_v17, %v717_v1  ;;  %v1082_v25 = vadd.f32 -0.5, %v718_v16  ;;  %vm719_vm12 = vcmp.lt.f32.partialorder %v718_v16, 1.0 }
  0xc1   : > { %v801_v57 = vrot.slane %v800_v55, 1  ;;  %v730_v59 = vmul.f32 0.5, %v727_v54  ;;  %v728_v61 = vand.u32 2147483647, %v727_v54 }
  0xc2   : > { %v723_v36 = vsel %vm719_vm12, %v721_v24, %v1082_v25 }
  0xc3   : > { %v802_v60 = vadd.f32 %v801_v57, %v800_v55  ;;  %v731_v4 = vmul.f32 %v730_v59, %v727_v54  ;;  %v1083_v9 = vadd.f32 -0.5, %v728_v61  ;;  %vm1328_vm11 = vcmp.lt.f32.partialorder %v728_v61, 1.0 }
  0xc4   : > { %v1137_v62 = vpop.eup %1136 }
  0xc5   : > { %v1139_v63 = vpop.eup %1138  ;;  %v706_v0 = vmul.f32 0.6931472, %v1137_v62  ;;  %v806_v2 = vsub.f32 %v805_v58, %v802_v60  ;;  %v733_v20 = vsel %vm1328_vm11, %v731_v4, %v1083_v9 }
  0xc6   : > { %v714_v3 = vmul.f32 0.6931472, %v1139_v63  ;;  %v735_v28 = vrot.slane %v733_v20, 1 }
  0xc7   : > { %v708_v5 = vmul.f32 5.0, %v706_v0  ;;  %v810_v14 = vsel %vm684_vm9, 0.0, %v806_v2  ;;  %v813_v6 = vsel %vm684_vm9, %v806_v2, 0.0 }
  0xc8   : > { %v715_v10 = vmul.f32 5.0, %v714_v3  ;;  %811 = vst [vmem:[%s572_s24] sm:$0x1] %v810_v14  ;;  %v814_v11 = vsel %vm768_vm10, %v813_v6, 0.0  ;;  %v737_v38 = vadd.f32 %v735_v28, %v723_v36 }
  0xc9   : > { %v739_v13 = vrot.slane %v708_v5, 6  ;;  %815 = vadd.xlane.f32.xlu0 %v814_v11 }
  0xca   : > { %v753_v18 = vrot.slane %v715_v10, 5 }
  0xcb   : > { %v741_v21 = vsub.f32 %v716_v53, %v739_v13 }
  0xcc   : > { %v755_v23 = vsub.f32 %v716_v53, %v753_v18 }
  0xcd   : > { %823 = vadd.xlane.f32.xlu0 %v822_v22  ;;  %v742_v26 = vand.u32 2147483647, %v741_v21  ;;  %v744_v27 = vmul.f32 0.5, %v741_v21 }
  0xce   : > { %v756_v29 = vand.u32 2147483647, %v755_v23  ;;  %v758_v31 = vmul.f32 0.5, %v755_v23 }
  0xcf   : > { %vm743_vm13 = vcmp.lt.f32.partialorder %v742_v26, 1.0  ;;  %v745_v7 = vmul.f32 %v744_v27, %v741_v21  ;;  %v1084_v32 = vadd.f32 -0.5, %v742_v26 }
  0xd0   : > { %vm757_vm14 = vcmp.lt.f32.partialorder %v756_v29, 1.0  ;;  %v759_v34 = vmul.f32 %v758_v31, %v755_v23  ;;  %v1085_v35 = vadd.f32 -0.5, %v756_v29 }
  0xd1   : > { %v747_v37 = vsel %vm743_vm13, %v745_v7, %v1084_v32 }
  0xd2   : > { %v749_v39 = vrot.slane %v747_v37, 2  ;;  %v761_v40 = vsel %vm757_vm14, %v759_v34, %v1085_v35 }
  0xd3   : > { %v763_v42 = vrot.slane %v761_v40, 3 }
  0xd4   : > { %v751_v41 = vadd.f32 %v749_v39, %v737_v38 }
  0xd6   : > { %v765_v43 = vadd.f32 %v763_v42, %v751_v41 }
  0xd8   : > { %v767_v44 = vsel %vm684_vm9, %v765_v43, 0.0 }
  0xd9   : > { %v769_v45 = vsel %vm768_vm10, %v767_v44, 0.0 }
  0xda   : > { %770 = vadd.xlane.f32.xlu1 %v769_v45 }
 0x156   : > { %v816_v47 = vpop.xlane.xlu0 %815 }
 0x157   : > { %v817_v33 = vadd.f32 %v816_v47, %v812_v46 }
 0x159   : > { %818 = vst.msk [vmem:[#allocation3] sm:$0x1] %vm586_vm0, %v817_v33 }
 0x15a   : > { %v824_v19 = vpop.xlane.xlu0 %823 }
 0x15b   : > { %v825_v49 = vadd.f32 %v824_v19, %v819_v48 }
 0x15d   : > { %826 = vst.msk [vmem:[#allocation4] sm:$0x1] %vm586_vm0, %v825_v49 }
 0x160   : > { %v832_v30 = vld [vmem:[#allocation3] sm:$0x1] }
 0x161   : > { %833 = vst.msk [vmem:[%s578_s27] sm:$0x1] %vm586_vm0, %v832_v30 }
 0x164   : > { %v834_v50 = vld [vmem:[#allocation4] sm:$0x1] }
 0x165   : > { %835 = vst.msk [vmem:[%s581_s30] sm:$0x1] %vm586_vm0, %v834_v50 }
 0x167   : > { %v771_v51 = vpop.xlane.xlu1 %770 }
 0x168   : > { %v772_v52 = vadd.f32 %v771_v51, %v766_v8 }
 0x16a   : > { %774 = vst.msk [vmem:[#allocation2] sm:$0x1] %vm586_vm0, %v772_v52 }
 0x171   : > { %v830_v53 = vld [vmem:[#allocation2] sm:$0x1] }
 0x172   : > { %831 = vst.msk [vmem:[%s575_s14] sm:$0x1] %vm586_vm0, %v830_v53 }
 0x173 PF: > { %s22_s19 = sadd.s32 1, %s1162_s19   ;;  %s1382_s17 = smov %s1158_s18 }
 0x174   : > { %p19_p5 = scmp.ge.s32.totalorder %s22_s19, 4   ;;  %s1383_s18 = smov %s1385_s20 }
 0x176   :  { %21 = sbr.rel (!%p19_p5) target bundleno = 2 (0x2), region = 147 }

</bundles_post_ra>
